<compile_context>
chip_gen: v7x
topology: tpu7x:2x2x1
jax: 0.10.0
libtpu: 0.0.40
codegen_flags: <defaults>
</compile_context>

<pallas_src>
import functools

import numpy as np
import jax
import jax.numpy as jnp
from jax import lax
from jax.experimental import pallas as pl
from jax.experimental.pallas import tpu as pltpu


# ----------------------------------------------------------------------------
# In-kernel helpers (operate on VMEM values / refs)
# ----------------------------------------------------------------------------
def _softmax_last(s):
    """Row softmax over the last axis; the divide goes to the EUP reciprocal."""
    s = s - jnp.max(s, axis=-1, keepdims=True)
    p = jnp.exp(s)
    return p * pl.reciprocal(jnp.sum(p, axis=-1, keepdims=True), approx=True)


def _take_expert_refs(it, cfg):
    """Pull the refs for one LinearExperts block off the ref iterator."""
    n = 5 + (1 if cfg[0] > 1 else 0)        # +1 for the selection matrix if E > 1
    return tuple(next(it) for _ in range(n))


def _linear_experts(x, refs, cfg):
    """LinearExperts forward on an (M, K) value.

    refs = (Wt, b, Wrt, At, Bt[, sel]) with pre-transposed / expert-batched weights:
      Wt (K, O), b (1, O), Wrt (K, E), At (K, E*r), Bt (E*r, O), sel (E, E*r)
    cfg  = (lora_num, r, scaling)   -- static python values.
    """
    lora_num, r, scaling = cfg
    wt_ref, b_ref, wrt_ref, at_ref, bt_ref = refs[:5]

    out = jnp.dot(x, wt_ref[...], preferred_element_type=jnp.float32) + b_ref[...]

    # softmax routing weights over the experts
    route = _softmax_last(jnp.dot(x, wrt_ref[...],
                                  preferred_element_type=jnp.float32))     # (M, E)

    # batched low-rank experts: one (M,K)@(K,E*r) and one (M,E*r)@(E*r,O) matmul
    ax = jnp.dot(x, at_ref[...], preferred_element_type=jnp.float32)       # (M, E*r)
    if lora_num == 1:
        ax_scaled = route * ax                                             # (M,1)*(M,r)
    else:
        sel_ref = refs[5]                                                  # (E, E*r)
        rw = jnp.dot(route, sel_ref[...], preferred_element_type=jnp.float32)
        ax_scaled = ax * rw
    return out + jnp.dot(ax_scaled, bt_ref[...],
                         preferred_element_type=jnp.float32) * scaling


# ----------------------------------------------------------------------------
# Fused forward kernel: `bsz` batch elements per grid step (static unroll)
# ----------------------------------------------------------------------------
def _fused_attention_kernel(*refs, bsz, num_heads, head_dim, n_m,
                            id_add, has_mem, proj_cfg, idk_cfg, idv_cfg):
    it = iter(refs)
    x_ref = next(it)                                    # (bsz, N, C)
    id_ref = next(it) if id_add else None               # (bsz, N_m, C)
    mk_ref = next(it) if has_mem else None              # (bsz, N_mem, C) heads on lanes
    mv_ref = next(it) if has_mem else None              # (bsz, N_mem, C)
    qkv_wt_ref = next(it)                               # (C, 3C)  scale folded into q cols
    qkv_b_ref = next(it)                                # (1, 3C)
    proj_refs = _take_expert_refs(it, proj_cfg)
    if id_add:
        hexp_ref = next(it)                             # (H, C) head->lane expansion
        idk_refs = _take_expert_refs(it, idk_cfg)
        idv_refs = _take_expert_refs(it, idv_cfg)
    out_ref = next(it)                                  # (bsz, N, C)
    km_ref = next(it) if id_add else None               # (bsz, N_m, C)
    vm_ref = next(it) if id_add else None               # (bsz, N_m, C)

    C = num_heads * head_dim

    for bi in range(bsz):                               # static unroll (bsz is tiny)
        x = x_ref[bi]                                   # (N, C)
        qkv = jnp.dot(x, qkv_wt_ref[...],
                      preferred_element_type=jnp.float32) + qkv_b_ref[...]  # (N, 3C)
        q_all = qkv[:, :C]                              # scale already folded in
        k_all = qkv[:, C:2 * C]
        v_all = qkv[:, 2 * C:]

        if id_add:
            ide = id_ref[bi]                            # (N_m, C)
            id_k = _linear_experts(ide, idk_refs, idk_cfg)   # (N_m, H)
            id_v = _linear_experts(ide, idv_refs, idv_cfg)   # (N_m, C)
            gate = 1.0 + jnp.tanh(id_k)                 # (N_m, H)
            # expand per-head gate to lane-dense (N_m, C) via a tiny matmul
            gate_full = jnp.dot(gate, hexp_ref[...],
                                preferred_element_type=jnp.float32)
            k_m = k_all[:n_m, :] * gate_full            # (N_m, C) gated template keys
            v_m = v_all[:n_m, :] + id_v                 # (N_m, C)
        else:
            k_m = k_all[:n_m, :]
            v_m = v_all[:n_m, :]

        # key / value sets for the search-token attention (hoisted, single concat)
        if has_mem:
            k_full = jnp.concatenate([mk_ref[bi], k_all], axis=0)
            v_full = jnp.concatenate([mv_ref[bi], v_m, v_all[n_m:, :]], axis=0)
        elif id_add:
            k_full = k_all
            v_full = jnp.concatenate([v_m, v_all[n_m:, :]], axis=0)
        else:
            k_full = k_all
            v_full = v_all

        q_m = q_all[:n_m, :]
        q_s = q_all[n_m:, :]

        o_m, o_s = [], []
        for h in range(num_heads):                      # static unroll, H is small
            sl = slice(h * head_dim, (h + 1) * head_dim)
            # ---- template (memory-token) attention ----
            s_m = lax.dot_general(q_m[:, sl], k_m[:, sl], (((1,), (1,)), ((), ())),
                                  preferred_element_type=jnp.float32)      # (N_m, N_m)
            o_m.append(jnp.dot(_softmax_last(s_m), v_m[:, sl],
                               preferred_element_type=jnp.float32))        # (N_m, D)
            # ---- search-token attention ----
            s_s = lax.dot_general(q_s[:, sl], k_full[:, sl], (((1,), (1,)), ((), ())),
                                  preferred_element_type=jnp.float32)      # (N_s, Nk)
            o_s.append(jnp.dot(_softmax_last(s_s), v_full[:, sl],
                               preferred_element_type=jnp.float32))        # (N_s, D)

        # single lane-concat per section + one sublane concat -> lane-dense (N, C)
        x_attn = jnp.concatenate([jnp.concatenate(o_m, axis=-1),
                                  jnp.concatenate(o_s, axis=-1)], axis=0)

        # output projection (LinearExperts), written straight to the output block
        out_ref[bi] = _linear_experts(x_attn, proj_refs, proj_cfg)
        if id_add:
            km_ref[bi] = k_m                            # lane-dense (N_m, C)
            vm_ref[bi] = v_m


# ----------------------------------------------------------------------------
# Wrapper-side helpers
# ----------------------------------------------------------------------------
def _expert_sel(lora_num, r):
    """sel[i, j] = 1 iff low-rank column j belongs to expert i."""
    sel = np.zeros((lora_num, lora_num * r), np.float32)
    for i in range(lora_num):
        sel[i, i * r:(i + 1) * r] = 1.0
    return jnp.asarray(sel)


def _head_expand(num_heads, head_dim):
    """(H, C) matrix expanding a per-head scalar to its D lanes."""
    m = np.zeros((num_heads, num_heads * head_dim), np.float32)
    for h in range(num_heads):
        m[h, h * head_dim:(h + 1) * head_dim] = 1.0
    return jnp.asarray(m)


def _experts_weight_list(p):
    refs = [p["Wt"], p["b"], p["Wrt"], p["At"], p["Bt"]]
    if p["lora_num"] > 1:
        refs.append(_expert_sel(p["lora_num"], p["r"]))
    return refs


def _experts_cfg(p):
    return (p["lora_num"], p["r"], float(p["scaling"]))


def _default_batch_per_step(B):
    """Collapse the batch grid on single-TensorCore chips (v5e/v6e); keep one
    batch element per 'parallel' grid step on multi-TC chips (megacore/v7x)."""
    try:
        kind = jax.devices()[0].device_kind.lower()
    except Exception:
        return 1
    single_tc = any(t in kind for t in ("v5 lite", "v5e", "v5litepod",
                                        "v6 lite", "v6e"))
    return B if single_tc else 1


# ----------------------------------------------------------------------------
# Wrapper
# ----------------------------------------------------------------------------
def attention_forward(params, x, id_total, mem_k, mem_v, id_add=False,
                      batch_per_step=None):
    """Pallas forward. Mirrors Attention.forward (eval mode, dropout=identity)."""
    x = jnp.asarray(x, jnp.float32)
    B, N, C = x.shape
    H = params["num_heads"]
    D = C // H
    N_m = id_total.shape[1]
    has_mem = bool(id_add and (mem_k is not None))

    bsz = batch_per_step if batch_per_step is not None else _default_batch_per_step(B)
    bsz = max(1, min(int(bsz), B))
    if B % bsz != 0:
        bsz = 1
    steps = B // bsz

    # Fold the q scale into the q-columns of the qkv weight/bias (free, wrapper-side).
    scale = float(params["scale"])
    col_scale = jnp.concatenate([jnp.full((1, C), scale, jnp.float32),
                                 jnp.ones((1, 2 * C), jnp.float32)], axis=1)
    qkv_wt = params["qkv_wt"] * col_scale
    qkv_b = params["qkv_b"] * col_scale

    def batch_spec(shape):
        nd = len(shape)
        blk = (bsz,) + tuple(shape[1:])
        return pl.BlockSpec(blk, lambda b, nd=nd: (b,) + (0,) * (nd - 1))

    def full_spec(a):
        nd = a.ndim
        return pl.BlockSpec(a.shape, lambda b, nd=nd: (0,) * nd)

    inputs = [x]
    in_specs = [batch_spec(x.shape)]
    if id_add:
        idt = jnp.asarray(id_total, jnp.float32)
        inputs.append(idt)
        in_specs.append(batch_spec(idt.shape))
    if has_mem:
        N_mem = mem_k.shape[2]
        # lane-dense (B, N_mem, C) layout (heads packed on lanes) -> single
        # sublane concat with k/v inside the kernel.
        mem_k_flat = jnp.transpose(jnp.asarray(mem_k, jnp.float32),
                                   (0, 2, 1, 3)).reshape(B, N_mem, C)
        mem_v_flat = jnp.transpose(jnp.asarray(mem_v, jnp.float32),
                                   (0, 2, 1, 3)).reshape(B, N_mem, C)
        inputs += [mem_k_flat, mem_v_flat]
        in_specs += [batch_spec(mem_k_flat.shape), batch_spec(mem_v_flat.shape)]

    weights = [qkv_wt, qkv_b] + _experts_weight_list(params["proj"])
    if id_add:
        weights.append(_head_expand(H, D))
        weights += _experts_weight_list(params["id_k"])
        weights += _experts_weight_list(params["id_v"])
    inputs += weights
    in_specs += [full_spec(w) for w in weights]

    out_shapes = [jax.ShapeDtypeStruct((B, N, C), jnp.float32)]
    out_specs = [batch_spec((B, N, C))]
    if id_add:
        out_shapes += [jax.ShapeDtypeStruct((B, N_m, C), jnp.float32)] * 2
        out_specs += [batch_spec((B, N_m, C))] * 2

    kernel = functools.partial(
        _fused_attention_kernel,
        bsz=bsz, num_heads=H, head_dim=D, n_m=N_m,
        id_add=id_add, has_mem=has_mem,
        proj_cfg=_experts_cfg(params["proj"]),
        idk_cfg=_experts_cfg(params["id_k"]) if id_add else None,
        idv_cfg=_experts_cfg(params["id_v"]) if id_add else None)

    outs = pl.pallas_call(
        kernel,
        grid=(steps,),
        in_specs=in_specs,
        out_specs=tuple(out_specs) if id_add else out_specs[0],
        out_shape=tuple(out_shapes) if id_add else out_shapes[0],
        compiler_params=pltpu.CompilerParams(
            dimension_semantics=("parallel",) if bsz == 1 else ("arbitrary",)),
    )(*inputs)

    if id_add:
        out, km_flat, vm_flat = outs
        # free XLA plumbing: lane-dense kernel output -> (B, H, N_m, D)
        k_m = km_flat.reshape(B, N_m, H, D).transpose(0, 2, 1, 3)
        v_m = vm_flat.reshape(B, N_m, H, D).transpose(0, 2, 1, 3)
        return out, k_m, v_m
    return outs, None, None


# ----------------------------------------------------------------------------
# Pure-JAX reference (same math, used only to verify the Pallas path)
# ----------------------------------------------------------------------------
def _ref_linear_experts(x, p):
    out = x @ p["Wt"] + p["b"]
    route = jax.nn.softmax(x @ p["Wrt"], axis=-1)
    r = p["r"]
    for i in range(p["lora_num"]):
        low = (x @ p["At"][:, i * r:(i + 1) * r]) @ p["Bt"][i * r:(i + 1) * r]
        out = out + route[..., i:i + 1] * low * p["scaling"]
    return out


def attention_forward_ref(params, x, id_total, mem_k, mem_v, id_add=False):
    B, N, C = x.shape
    H = params["num_heads"]
    D = C // H
    N_m = id_total.shape[1]
    N_s = N - N_m

    qkv = x @ params["qkv_wt"] + params["qkv_b"]
    qkv = qkv.reshape(B, N, 3, H, D).transpose(2, 0, 3, 1, 4)
    q, k, v = qkv[0], qkv[1], qkv[2]
    v_m, v_s = v[:, :, :N_m], v[:, :, N_m:]
    k_m = k[:, :, :N_m]
    v_add_id = v
    if id_add:
        ID_K = _ref_linear_experts(id_total, params["id_k"])
        ID_V = _ref_linear_experts(id_total, params["id_v"])
        k_m = k_m * (1.0 + jnp.tanh(ID_K)).transpose(0, 2, 1)[..., None]
        v_m_flat = v_m.transpose(0, 2, 1, 3).reshape(B, N_m, C) + ID_V
        v_m = v_m_flat.reshape(B, N_m, H, D).transpose(0, 2, 1, 3)
        v_add_id = jnp.concatenate([v_m, v_s], axis=2)
    q = q * params["scale"]
    q_m, q_s = q[:, :, :N_m], q[:, :, N_m:]

    def attn(qq, kk, vv):
        s = jnp.einsum("bhqd,bhkd->bhqk", qq, kk)
        return jnp.einsum("bhqk,bhkd->bhqd", jax.nn.softmax(s, axis=-1), vv)

    x_m = attn(q_m, k_m, v_m).transpose(0, 2, 1, 3).reshape(B, N_m, C)
    if id_add and mem_k is not None:
        k = jnp.concatenate([mem_k, k], axis=2)
        v_add_id = jnp.concatenate([mem_v, v_add_id], axis=2)
    x_s = attn(q_s, k, v_add_id).transpose(0, 2, 1, 3).reshape(B, N_s, C)
    x_out = jnp.concatenate([x_m, x_s], axis=1)
    x_out = _ref_linear_experts(x_out, params["proj"])
    if id_add:
        return x_out, k_m, v_m
    return x_out, None, None


# ----------------------------------------------------------------------------
# Deterministic parameter init (synthetic; nonzero LoRA B to exercise the path)
# ----------------------------------------------------------------------------
def init_linear_experts(key, in_f, out_f, r, lora_num):
    ks = jax.random.split(key, 5)
    return dict(
        Wt=jax.random.normal(ks[0], (in_f, out_f), jnp.float32) * 0.02,
        b=jax.random.normal(ks[1], (1, out_f), jnp.float32) * 0.02,
        Wrt=jax.random.normal(ks[2], (in_f, lora_num), jnp.float32) * 0.02,
        # Expert-batched, pre-transposed LoRA: At[:, i*r:(i+1)*r] = A_i^T,
        # Bt[i*r:(i+1)*r, :] = B_i^T.
        At=jax.random.normal(ks[3], (in_f, lora_num * r), jnp.float32) * 0.02,
        Bt=jax.random.normal(ks[4], (lora_num * r, out_f), jnp.float32) * 0.02,
        lora_num=lora_num, r=r, scaling=1.0 / r)   # lora_alpha=1 => alpha/r


def init_attention_params(key, dim, num_heads, r, expert_num):
    ks = jax.random.split(key, 5)
    return dict(
        num_heads=num_heads,
        scale=(dim // num_heads) ** -0.5,
        qkv_wt=jax.random.normal(ks[0], (dim, 3 * dim), jnp.float32) * 0.02,
        qkv_b=jax.random.normal(ks[1], (1, 3 * dim), jnp.float32) * 0.02,
        proj=init_linear_experts(ks[2], dim, dim, r, expert_num),
        id_k=init_linear_experts(ks[3], dim, num_heads, r, 1),
        id_v=init_linear_experts(ks[4], dim, dim, r, 1),
    )


# ----------------------------------------------------------------------------
if __name__ == "__main__":
    key = jax.random.PRNGKey(0)

    B, C, H = 2, 32, 4                     # dim=32, num_heads=4, head_dim=8
    D = C // H
    N_m, N_s, N_mem = 8, 16, 8             # template / search / memory lengths
    N = N_m + N_s
    r, expert_num = 4, 2                   # cfg.EXPERT_LOW_RANK, cfg.EXPERT_NUM

    kp, kx = jax.random.split(key)
    params = init_attention_params(kp, C, H, r, expert_num)

    kx1, kx2, kx3, kx4 = jax.random.split(kx, 4)
    x = jax.random.normal(kx1, (B, N, C), jnp.float32)
    id_total = jax.random.normal(kx2, (B, N_m, C), jnp.float32)
    mem_k = jax.random.normal(kx3, (B, H, N_mem, D), jnp.float32)
    mem_v = jax.random.normal(kx4, (B, H, N_mem, D), jnp.float32)

    # Tolerance loosened vs exact-divide reference because the kernel uses the
    # approximate EUP reciprocal for all softmax normalizations.
    TOL = dict(rtol=5e-3, atol=5e-3)

    # --- id_add=True path (template gating + memory concat) ---
    out, k_m, v_m = attention_forward(params, x, id_total, mem_k, mem_v,
                                      id_add=True)
    jax.block_until_ready((out, k_m, v_m))
    ref_out, ref_km, ref_vm = attention_forward_ref(params, x, id_total,
                                                    mem_k, mem_v, id_add=True)
    np.testing.assert_allclose(np.asarray(out), np.asarray(ref_out), **TOL)
    np.testing.assert_allclose(np.asarray(k_m), np.asarray(ref_km), **TOL)
    np.testing.assert_allclose(np.asarray(v_m), np.asarray(ref_vm), **TOL)

    # --- id_add=True path without memory tokens ---
    out_nm, k_m_nm, v_m_nm = attention_forward(params, x, id_total, None, None,
                                               id_add=True)
    jax.block_until_ready((out_nm, k_m_nm, v_m_nm))
    ref_nm, ref_km_nm, ref_vm_nm = attention_forward_ref(params, x, id_total,
                                                         None, None, id_add=True)
    np.testing.assert_allclose(np.asarray(out_nm), np.asarray(ref_nm), **TOL)
    np.testing.assert_allclose(np.asarray(k_m_nm), np.asarray(ref_km_nm), **TOL)
    np.testing.assert_allclose(np.asarray(v_m_nm), np.asarray(ref_vm_nm), **TOL)

    # --- id_add=False path ---
    out2, _, _ = attention_forward(params, x, id_total, None, None, id_add=False)
    jax.block_until_ready(out2)
    ref2, _, _ = attention_forward_ref(params, x, id_total, None, None,
                                       id_add=False)
    np.testing.assert_allclose(np.asarray(out2), np.asarray(ref2), **TOL)

    print("KERNEL_OK")
</pallas_src>

<mosaic_0001>
module attributes {stable_mosaic.version = 11 : i64} {
  func.func @_fused_attention_kernel(%arg0: i32, %arg1: memref<1x24x32xf32, #tpu.memory_space<vmem>>, %arg2: memref<1x8x32xf32, #tpu.memory_space<vmem>>, %arg3: memref<1x8x32xf32, #tpu.memory_space<vmem>>, %arg4: memref<1x8x32xf32, #tpu.memory_space<vmem>>, %arg5: memref<32x96xf32, #tpu.memory_space<vmem>>, %arg6: memref<1x96xf32, #tpu.memory_space<vmem>>, %arg7: memref<32x32xf32, #tpu.memory_space<vmem>>, %arg8: memref<1x32xf32, #tpu.memory_space<vmem>>, %arg9: memref<32x2xf32, #tpu.memory_space<vmem>>, %arg10: memref<32x8xf32, #tpu.memory_space<vmem>>, %arg11: memref<8x32xf32, #tpu.memory_space<vmem>>, %arg12: memref<2x8xf32, #tpu.memory_space<vmem>>, %arg13: memref<4x32xf32, #tpu.memory_space<vmem>>, %arg14: memref<32x4xf32, #tpu.memory_space<vmem>>, %arg15: memref<1x4xf32, #tpu.memory_space<vmem>>, %arg16: memref<32x1xf32, #tpu.memory_space<vmem>>, %arg17: memref<32x4xf32, #tpu.memory_space<vmem>>, %arg18: memref<4x4xf32, #tpu.memory_space<vmem>>, %arg19: memref<32x32xf32, #tpu.memory_space<vmem>>, %arg20: memref<1x32xf32, #tpu.memory_space<vmem>>, %arg21: memref<32x1xf32, #tpu.memory_space<vmem>>, %arg22: memref<32x4xf32, #tpu.memory_space<vmem>>, %arg23: memref<4x32xf32, #tpu.memory_space<vmem>>, %arg24: memref<1x24x32xf32, #tpu.memory_space<vmem>>, %arg25: memref<1x8x32xf32, #tpu.memory_space<vmem>>, %arg26: memref<1x8x32xf32, #tpu.memory_space<vmem>>) attributes {dimension_semantics = [#tpu.dimension_semantics<parallel>], iteration_bounds = array<i64: 2>, scalar_prefetch = 0 : i64, scratch_operands = 0 : i64, tpu.core_type = #tpu.core_type<tc>, window_params = [{transform_indices = @transform_0, window_bounds = array<i64: 1, 24, 32>}, {transform_indices = @transform_1, window_bounds = array<i64: 1, 8, 32>}, {transform_indices = @transform_2, window_bounds = array<i64: 1, 8, 32>}, {transform_indices = @transform_3, window_bounds = array<i64: 1, 8, 32>}, {pipeline_mode = #tpu.pipeline_mode<synchronous>, transform_indices = @transform_4, window_bounds = array<i64: 32, 96>}, {pipeline_mode = #tpu.pipeline_mode<synchronous>, transform_indices = @transform_5, window_bounds = array<i64: 1, 96>}, {pipeline_mode = #tpu.pipeline_mode<synchronous>, transform_indices = @transform_6, window_bounds = array<i64: 32, 32>}, {pipeline_mode = #tpu.pipeline_mode<synchronous>, transform_indices = @transform_7, window_bounds = array<i64: 1, 32>}, {pipeline_mode = #tpu.pipeline_mode<synchronous>, transform_indices = @transform_8, window_bounds = array<i64: 32, 2>}, {pipeline_mode = #tpu.pipeline_mode<synchronous>, transform_indices = @transform_9, window_bounds = array<i64: 32, 8>}, {pipeline_mode = #tpu.pipeline_mode<synchronous>, transform_indices = @transform_10, window_bounds = array<i64: 8, 32>}, {pipeline_mode = #tpu.pipeline_mode<synchronous>, transform_indices = @transform_11, window_bounds = array<i64: 2, 8>}, {pipeline_mode = #tpu.pipeline_mode<synchronous>, transform_indices = @transform_12, window_bounds = array<i64: 4, 32>}, {pipeline_mode = #tpu.pipeline_mode<synchronous>, transform_indices = @transform_13, window_bounds = array<i64: 32, 4>}, {pipeline_mode = #tpu.pipeline_mode<synchronous>, transform_indices = @transform_14, window_bounds = array<i64: 1, 4>}, {pipeline_mode = #tpu.pipeline_mode<synchronous>, transform_indices = @transform_15, window_bounds = array<i64: 32, 1>}, {pipeline_mode = #tpu.pipeline_mode<synchronous>, transform_indices = @transform_16, window_bounds = array<i64: 32, 4>}, {pipeline_mode = #tpu.pipeline_mode<synchronous>, transform_indices = @transform_17, window_bounds = array<i64: 4, 4>}, {pipeline_mode = #tpu.pipeline_mode<synchronous>, transform_indices = @transform_18, window_bounds = array<i64: 32, 32>}, {pipeline_mode = #tpu.pipeline_mode<synchronous>, transform_indices = @transform_19, window_bounds = array<i64: 1, 32>}, {pipeline_mode = #tpu.pipeline_mode<synchronous>, transform_indices = @transform_20, window_bounds = array<i64: 32, 1>}, {pipeline_mode = #tpu.pipeline_mode<synchronous>, transform_indices = @transform_21, window_bounds = array<i64: 32, 4>}, {pipeline_mode = #tpu.pipeline_mode<synchronous>, transform_indices = @transform_22, window_bounds = array<i64: 4, 32>}, {transform_indices = @transform_23, window_bounds = array<i64: 1, 24, 32>}, {transform_indices = @transform_24, window_bounds = array<i64: 1, 8, 32>}, {transform_indices = @transform_25, window_bounds = array<i64: 1, 8, 32>}]} {
    %c0 = arith.constant 0 : index
    %c0_0 = arith.constant 0 : index
    %c0_1 = arith.constant 0 : index
    %0 = vector.load %arg1[%c0, %c0_0, %c0_1] : memref<1x24x32xf32, #tpu.memory_space<vmem>>, vector<1x24x32xf32>
    %1 = vector.shape_cast %0 : vector<1x24x32xf32> to vector<24x32xf32>
    %c0_2 = arith.constant 0 : index
    %c0_3 = arith.constant 0 : index
    %2 = vector.load %arg5[%c0_2, %c0_3] : memref<32x96xf32, #tpu.memory_space<vmem>>, vector<32x96xf32>
    %cst = arith.constant dense<0.000000e+00> : vector<24x96xf32>
    %3 = tpu.matmul %1, %2, %cst {dimension_numbers = #tpu.dot_dimension_numbers<[1], [0], [0], [1], [0, 0, 1, 1], [], []>} : vector<24x32xf32>, vector<32x96xf32>, vector<24x96xf32> -> vector<24x96xf32>
    %c0_4 = arith.constant 0 : index
    %c0_5 = arith.constant 0 : index
    %4 = vector.load %arg6[%c0_4, %c0_5] : memref<1x96xf32, #tpu.memory_space<vmem>>, vector<1x96xf32>
    %5 = vector.broadcast %4 : vector<1x96xf32> to vector<24x96xf32>
    %6 = arith.addf %3, %5 : vector<24x96xf32>
    %7 = vector.extract_strided_slice %6 {offsets = [0, 0], sizes = [24, 32], strides = [1, 1]} : vector<24x96xf32> to vector<24x32xf32>
    %8 = vector.extract_strided_slice %6 {offsets = [0, 32], sizes = [24, 32], strides = [1, 1]} : vector<24x96xf32> to vector<24x32xf32>
    %9 = vector.extract_strided_slice %6 {offsets = [0, 64], sizes = [24, 32], strides = [1, 1]} : vector<24x96xf32> to vector<24x32xf32>
    %c0_6 = arith.constant 0 : index
    %c0_7 = arith.constant 0 : index
    %c0_8 = arith.constant 0 : index
    %10 = vector.load %arg2[%c0_6, %c0_7, %c0_8] : memref<1x8x32xf32, #tpu.memory_space<vmem>>, vector<1x8x32xf32>
    %11 = vector.shape_cast %10 : vector<1x8x32xf32> to vector<8x32xf32>
    %c0_9 = arith.constant 0 : index
    %c0_10 = arith.constant 0 : index
    %12 = vector.load %arg14[%c0_9, %c0_10] : memref<32x4xf32, #tpu.memory_space<vmem>>, vector<32x4xf32>
    %cst_11 = arith.constant dense<0.000000e+00> : vector<8x4xf32>
    %13 = tpu.matmul %11, %12, %cst_11 {dimension_numbers = #tpu.dot_dimension_numbers<[1], [0], [0], [1], [0, 0, 1, 1], [], []>} : vector<8x32xf32>, vector<32x4xf32>, vector<8x4xf32> -> vector<8x4xf32>
    %c0_12 = arith.constant 0 : index
    %c0_13 = arith.constant 0 : index
    %14 = vector.load %arg15[%c0_12, %c0_13] : memref<1x4xf32, #tpu.memory_space<vmem>>, vector<1x4xf32>
    %15 = vector.broadcast %14 : vector<1x4xf32> to vector<8x4xf32>
    %16 = arith.addf %13, %15 : vector<8x4xf32>
    %c0_14 = arith.constant 0 : index
    %c0_15 = arith.constant 0 : index
    %17 = vector.load %arg16[%c0_14, %c0_15] : memref<32x1xf32, #tpu.memory_space<vmem>>, vector<32x1xf32>
    %cst_16 = arith.constant dense<0.000000e+00> : vector<8x1xf32>
    %18 = tpu.matmul %11, %17, %cst_16 {dimension_numbers = #tpu.dot_dimension_numbers<[1], [0], [0], [1], [0, 0, 1, 1], [], []>} : vector<8x32xf32>, vector<32x1xf32>, vector<8x1xf32> -> vector<8x1xf32>
    %cst_17 = arith.constant dense<0xFF800000> : vector<8xf32>
    %19 = vector.multi_reduction <maximumf>, %18, %cst_17 [1] : vector<8x1xf32> to vector<8xf32>
    %20 = vector.shape_cast %19 : vector<8xf32> to vector<8x1xf32>
    %21 = arith.subf %18, %20 : vector<8x1xf32>
    %22 = math.exp %21 : vector<8x1xf32>
    %cst_18 = arith.constant dense<0.000000e+00> : vector<8xf32>
    %23 = vector.multi_reduction <add>, %22, %cst_18 [1] : vector<8x1xf32> to vector<8xf32>
    %24 = vector.shape_cast %23 : vector<8xf32> to vector<8x1xf32>
    %25 = tpu.reciprocal %24 {approx = true} : vector<8x1xf32> -> vector<8x1xf32>
    %26 = arith.mulf %22, %25 : vector<8x1xf32>
    %c0_19 = arith.constant 0 : index
    %c0_20 = arith.constant 0 : index
    %27 = vector.load %arg17[%c0_19, %c0_20] : memref<32x4xf32, #tpu.memory_space<vmem>>, vector<32x4xf32>
    %cst_21 = arith.constant dense<0.000000e+00> : vector<8x4xf32>
    %28 = tpu.matmul %11, %27, %cst_21 {dimension_numbers = #tpu.dot_dimension_numbers<[1], [0], [0], [1], [0, 0, 1, 1], [], []>} : vector<8x32xf32>, vector<32x4xf32>, vector<8x4xf32> -> vector<8x4xf32>
    %29 = vector.broadcast %26 : vector<8x1xf32> to vector<8x4xf32>
    %30 = arith.mulf %29, %28 : vector<8x4xf32>
    %c0_22 = arith.constant 0 : index
    %c0_23 = arith.constant 0 : index
    %31 = vector.load %arg18[%c0_22, %c0_23] : memref<4x4xf32, #tpu.memory_space<vmem>>, vector<4x4xf32>
    %cst_24 = arith.constant dense<0.000000e+00> : vector<8x4xf32>
    %32 = tpu.matmul %30, %31, %cst_24 {dimension_numbers = #tpu.dot_dimension_numbers<[1], [0], [0], [1], [0, 0, 1, 1], [], []>} : vector<8x4xf32>, vector<4x4xf32>, vector<8x4xf32> -> vector<8x4xf32>
    %cst_25 = arith.constant 2.500000e-01 : f32
    %33 = vector.broadcast %cst_25 : f32 to vector<8x4xf32>
    %34 = arith.mulf %32, %33 : vector<8x4xf32>
    %35 = arith.addf %16, %34 : vector<8x4xf32>
    %c0_26 = arith.constant 0 : index
    %c0_27 = arith.constant 0 : index
    %36 = vector.load %arg19[%c0_26, %c0_27] : memref<32x32xf32, #tpu.memory_space<vmem>>, vector<32x32xf32>
    %cst_28 = arith.constant dense<0.000000e+00> : vector<8x32xf32>
    %37 = tpu.matmul %11, %36, %cst_28 {dimension_numbers = #tpu.dot_dimension_numbers<[1], [0], [0], [1], [0, 0, 1, 1], [], []>} : vector<8x32xf32>, vector<32x32xf32>, vector<8x32xf32> -> vector<8x32xf32>
    %c0_29 = arith.constant 0 : index
    %c0_30 = arith.constant 0 : index
    %38 = vector.load %arg20[%c0_29, %c0_30] : memref<1x32xf32, #tpu.memory_space<vmem>>, vector<1x32xf32>
    %39 = vector.broadcast %38 : vector<1x32xf32> to vector<8x32xf32>
    %40 = arith.addf %37, %39 : vector<8x32xf32>
    %c0_31 = arith.constant 0 : index
    %c0_32 = arith.constant 0 : index
    %41 = vector.load %arg21[%c0_31, %c0_32] : memref<32x1xf32, #tpu.memory_space<vmem>>, vector<32x1xf32>
    %cst_33 = arith.constant dense<0.000000e+00> : vector<8x1xf32>
    %42 = tpu.matmul %11, %41, %cst_33 {dimension_numbers = #tpu.dot_dimension_numbers<[1], [0], [0], [1], [0, 0, 1, 1], [], []>} : vector<8x32xf32>, vector<32x1xf32>, vector<8x1xf32> -> vector<8x1xf32>
    %cst_34 = arith.constant dense<0xFF800000> : vector<8xf32>
    %43 = vector.multi_reduction <maximumf>, %42, %cst_34 [1] : vector<8x1xf32> to vector<8xf32>
    %44 = vector.shape_cast %43 : vector<8xf32> to vector<8x1xf32>
    %45 = arith.subf %42, %44 : vector<8x1xf32>
    %46 = math.exp %45 : vector<8x1xf32>
    %cst_35 = arith.constant dense<0.000000e+00> : vector<8xf32>
    %47 = vector.multi_reduction <add>, %46, %cst_35 [1] : vector<8x1xf32> to vector<8xf32>
    %48 = vector.shape_cast %47 : vector<8xf32> to vector<8x1xf32>
    %49 = tpu.reciprocal %48 {approx = true} : vector<8x1xf32> -> vector<8x1xf32>
    %50 = arith.mulf %46, %49 : vector<8x1xf32>
    %c0_36 = arith.constant 0 : index
    %c0_37 = arith.constant 0 : index
    %51 = vector.load %arg22[%c0_36, %c0_37] : memref<32x4xf32, #tpu.memory_space<vmem>>, vector<32x4xf32>
    %cst_38 = arith.constant dense<0.000000e+00> : vector<8x4xf32>
    %52 = tpu.matmul %11, %51, %cst_38 {dimension_numbers = #tpu.dot_dimension_numbers<[1], [0], [0], [1], [0, 0, 1, 1], [], []>} : vector<8x32xf32>, vector<32x4xf32>, vector<8x4xf32> -> vector<8x4xf32>
    %53 = vector.broadcast %50 : vector<8x1xf32> to vector<8x4xf32>
    %54 = arith.mulf %53, %52 : vector<8x4xf32>
    %c0_39 = arith.constant 0 : index
    %c0_40 = arith.constant 0 : index
    %55 = vector.load %arg23[%c0_39, %c0_40] : memref<4x32xf32, #tpu.memory_space<vmem>>, vector<4x32xf32>
    %cst_41 = arith.constant dense<0.000000e+00> : vector<8x32xf32>
    %56 = tpu.matmul %54, %55, %cst_41 {dimension_numbers = #tpu.dot_dimension_numbers<[1], [0], [0], [1], [0, 0, 1, 1], [], []>} : vector<8x4xf32>, vector<4x32xf32>, vector<8x32xf32> -> vector<8x32xf32>
    %cst_42 = arith.constant 2.500000e-01 : f32
    %57 = vector.broadcast %cst_42 : f32 to vector<8x32xf32>
    %58 = arith.mulf %56, %57 : vector<8x32xf32>
    %59 = arith.addf %40, %58 : vector<8x32xf32>
    %60 = math.tanh %35 : vector<8x4xf32>
    %cst_43 = arith.constant 1.000000e+00 : f32
    %61 = vector.broadcast %cst_43 : f32 to vector<8x4xf32>
    %62 = arith.addf %61, %60 : vector<8x4xf32>
    %c0_44 = arith.constant 0 : index
    %c0_45 = arith.constant 0 : index
    %63 = vector.load %arg13[%c0_44, %c0_45] : memref<4x32xf32, #tpu.memory_space<vmem>>, vector<4x32xf32>
    %cst_46 = arith.constant dense<0.000000e+00> : vector<8x32xf32>
    %64 = tpu.matmul %62, %63, %cst_46 {dimension_numbers = #tpu.dot_dimension_numbers<[1], [0], [0], [1], [0, 0, 1, 1], [], []>} : vector<8x4xf32>, vector<4x32xf32>, vector<8x32xf32> -> vector<8x32xf32>
    %65 = vector.extract_strided_slice %8 {offsets = [0, 0], sizes = [8, 32], strides = [1, 1]} : vector<24x32xf32> to vector<8x32xf32>
    %66 = arith.mulf %65, %64 : vector<8x32xf32>
    %67 = vector.extract_strided_slice %9 {offsets = [0, 0], sizes = [8, 32], strides = [1, 1]} : vector<24x32xf32> to vector<8x32xf32>
    %68 = arith.addf %67, %59 : vector<8x32xf32>
    %c0_47 = arith.constant 0 : index
    %c0_48 = arith.constant 0 : index
    %c0_49 = arith.constant 0 : index
    %69 = vector.load %arg3[%c0_47, %c0_48, %c0_49] : memref<1x8x32xf32, #tpu.memory_space<vmem>>, vector<1x8x32xf32>
    %70 = vector.shape_cast %69 : vector<1x8x32xf32> to vector<8x32xf32>
    %71 = tpu.concatenate %70, %8 in 0 : vector<8x32xf32>, vector<24x32xf32> -> vector<32x32xf32>
    %c0_50 = arith.constant 0 : index
    %c0_51 = arith.constant 0 : index
    %c0_52 = arith.constant 0 : index
    %72 = vector.load %arg4[%c0_50, %c0_51, %c0_52] : memref<1x8x32xf32, #tpu.memory_space<vmem>>, vector<1x8x32xf32>
    %73 = vector.shape_cast %72 : vector<1x8x32xf32> to vector<8x32xf32>
    %74 = vector.extract_strided_slice %9 {offsets = [8, 0], sizes = [16, 32], strides = [1, 1]} : vector<24x32xf32> to vector<16x32xf32>
    %75 = tpu.concatenate %73, %68, %74 in 0 : vector<8x32xf32>, vector<8x32xf32>, vector<16x32xf32> -> vector<32x32xf32>
    %76 = vector.extract_strided_slice %7 {offsets = [0, 0], sizes = [8, 32], strides = [1, 1]} : vector<24x32xf32> to vector<8x32xf32>
    %77 = vector.extract_strided_slice %7 {offsets = [8, 0], sizes = [16, 32], strides = [1, 1]} : vector<24x32xf32> to vector<16x32xf32>
    %78 = vector.extract_strided_slice %76 {offsets = [0, 0], sizes = [8, 8], strides = [1, 1]} : vector<8x32xf32> to vector<8x8xf32>
    %79 = vector.extract_strided_slice %66 {offsets = [0, 0], sizes = [8, 8], strides = [1, 1]} : vector<8x32xf32> to vector<8x8xf32>
    %cst_53 = arith.constant dense<0.000000e+00> : vector<8x8xf32>
    %80 = tpu.matmul %78, %79, %cst_53 {dimension_numbers = #tpu.dot_dimension_numbers<[1], [1], [0], [0], [0, 0, 1, 0], [], []>} : vector<8x8xf32>, vector<8x8xf32>, vector<8x8xf32> -> vector<8x8xf32>
    %cst_54 = arith.constant dense<0xFF800000> : vector<8xf32>
    %81 = vector.multi_reduction <maximumf>, %80, %cst_54 [1] : vector<8x8xf32> to vector<8xf32>
    %82 = vector.shape_cast %81 : vector<8xf32> to vector<8x1xf32>
    %83 = vector.broadcast %82 : vector<8x1xf32> to vector<8x8xf32>
    %84 = arith.subf %80, %83 : vector<8x8xf32>
    %85 = math.exp %84 : vector<8x8xf32>
    %cst_55 = arith.constant dense<0.000000e+00> : vector<8xf32>
    %86 = vector.multi_reduction <add>, %85, %cst_55 [1] : vector<8x8xf32> to vector<8xf32>
    %87 = vector.shape_cast %86 : vector<8xf32> to vector<8x1xf32>
    %88 = tpu.reciprocal %87 {approx = true} : vector<8x1xf32> -> vector<8x1xf32>
    %89 = vector.broadcast %88 : vector<8x1xf32> to vector<8x8xf32>
    %90 = arith.mulf %85, %89 : vector<8x8xf32>
    %91 = vector.extract_strided_slice %68 {offsets = [0, 0], sizes = [8, 8], strides = [1, 1]} : vector<8x32xf32> to vector<8x8xf32>
    %cst_56 = arith.constant dense<0.000000e+00> : vector<8x8xf32>
    %92 = tpu.matmul %90, %91, %cst_56 {dimension_numbers = #tpu.dot_dimension_numbers<[1], [0], [0], [1], [0, 0, 1, 1], [], []>} : vector<8x8xf32>, vector<8x8xf32>, vector<8x8xf32> -> vector<8x8xf32>
    %93 = vector.extract_strided_slice %77 {offsets = [0, 0], sizes = [16, 8], strides = [1, 1]} : vector<16x32xf32> to vector<16x8xf32>
    %94 = vector.extract_strided_slice %71 {offsets = [0, 0], sizes = [32, 8], strides = [1, 1]} : vector<32x32xf32> to vector<32x8xf32>
    %cst_57 = arith.constant dense<0.000000e+00> : vector<16x32xf32>
    %95 = tpu.matmul %93, %94, %cst_57 {dimension_numbers = #tpu.dot_dimension_numbers<[1], [1], [0], [0], [0, 0, 1, 0], [], []>} : vector<16x8xf32>, vector<32x8xf32>, vector<16x32xf32> -> vector<16x32xf32>
    %cst_58 = arith.constant dense<0xFF800000> : vector<16xf32>
    %96 = vector.multi_reduction <maximumf>, %95, %cst_58 [1] : vector<16x32xf32> to vector<16xf32>
    %97 = vector.shape_cast %96 : vector<16xf32> to vector<16x1xf32>
    %98 = vector.broadcast %97 : vector<16x1xf32> to vector<16x32xf32>
    %99 = arith.subf %95, %98 : vector<16x32xf32>
    %100 = math.exp %99 : vector<16x32xf32>
    %cst_59 = arith.constant dense<0.000000e+00> : vector<16xf32>
    %101 = vector.multi_reduction <add>, %100, %cst_59 [1] : vector<16x32xf32> to vector<16xf32>
    %102 = vector.shape_cast %101 : vector<16xf32> to vector<16x1xf32>
    %103 = tpu.reciprocal %102 {approx = true} : vector<16x1xf32> -> vector<16x1xf32>
    %104 = vector.broadcast %103 : vector<16x1xf32> to vector<16x32xf32>
    %105 = arith.mulf %100, %104 : vector<16x32xf32>
    %106 = vector.extract_strided_slice %75 {offsets = [0, 0], sizes = [32, 8], strides = [1, 1]} : vector<32x32xf32> to vector<32x8xf32>
    %cst_60 = arith.constant dense<0.000000e+00> : vector<16x8xf32>
    %107 = tpu.matmul %105, %106, %cst_60 {dimension_numbers = #tpu.dot_dimension_numbers<[1], [0], [0], [1], [0, 0, 1, 1], [], []>} : vector<16x32xf32>, vector<32x8xf32>, vector<16x8xf32> -> vector<16x8xf32>
    %108 = vector.extract_strided_slice %76 {offsets = [0, 8], sizes = [8, 8], strides = [1, 1]} : vector<8x32xf32> to vector<8x8xf32>
    %109 = vector.extract_strided_slice %66 {offsets = [0, 8], sizes = [8, 8], strides = [1, 1]} : vector<8x32xf32> to vector<8x8xf32>
    %cst_61 = arith.constant dense<0.000000e+00> : vector<8x8xf32>
    %110 = tpu.matmul %108, %109, %cst_61 {dimension_numbers = #tpu.dot_dimension_numbers<[1], [1], [0], [0], [0, 0, 1, 0], [], []>} : vector<8x8xf32>, vector<8x8xf32>, vector<8x8xf32> -> vector<8x8xf32>
    %cst_62 = arith.constant dense<0xFF800000> : vector<8xf32>
    %111 = vector.multi_reduction <maximumf>, %110, %cst_62 [1] : vector<8x8xf32> to vector<8xf32>
    %112 = vector.shape_cast %111 : vector<8xf32> to vector<8x1xf32>
    %113 = vector.broadcast %112 : vector<8x1xf32> to vector<8x8xf32>
    %114 = arith.subf %110, %113 : vector<8x8xf32>
    %115 = math.exp %114 : vector<8x8xf32>
    %cst_63 = arith.constant dense<0.000000e+00> : vector<8xf32>
    %116 = vector.multi_reduction <add>, %115, %cst_63 [1] : vector<8x8xf32> to vector<8xf32>
    %117 = vector.shape_cast %116 : vector<8xf32> to vector<8x1xf32>
    %118 = tpu.reciprocal %117 {approx = true} : vector<8x1xf32> -> vector<8x1xf32>
    %119 = vector.broadcast %118 : vector<8x1xf32> to vector<8x8xf32>
    %120 = arith.mulf %115, %119 : vector<8x8xf32>
    %121 = vector.extract_strided_slice %68 {offsets = [0, 8], sizes = [8, 8], strides = [1, 1]} : vector<8x32xf32> to vector<8x8xf32>
    %cst_64 = arith.constant dense<0.000000e+00> : vector<8x8xf32>
    %122 = tpu.matmul %120, %121, %cst_64 {dimension_numbers = #tpu.dot_dimension_numbers<[1], [0], [0], [1], [0, 0, 1, 1], [], []>} : vector<8x8xf32>, vector<8x8xf32>, vector<8x8xf32> -> vector<8x8xf32>
    %123 = vector.extract_strided_slice %77 {offsets = [0, 8], sizes = [16, 8], strides = [1, 1]} : vector<16x32xf32> to vector<16x8xf32>
    %124 = vector.extract_strided_slice %71 {offsets = [0, 8], sizes = [32, 8], strides = [1, 1]} : vector<32x32xf32> to vector<32x8xf32>
    %cst_65 = arith.constant dense<0.000000e+00> : vector<16x32xf32>
    %125 = tpu.matmul %123, %124, %cst_65 {dimension_numbers = #tpu.dot_dimension_numbers<[1], [1], [0], [0], [0, 0, 1, 0], [], []>} : vector<16x8xf32>, vector<32x8xf32>, vector<16x32xf32> -> vector<16x32xf32>
    %cst_66 = arith.constant dense<0xFF800000> : vector<16xf32>
    %126 = vector.multi_reduction <maximumf>, %125, %cst_66 [1] : vector<16x32xf32> to vector<16xf32>
    %127 = vector.shape_cast %126 : vector<16xf32> to vector<16x1xf32>
    %128 = vector.broadcast %127 : vector<16x1xf32> to vector<16x32xf32>
    %129 = arith.subf %125, %128 : vector<16x32xf32>
    %130 = math.exp %129 : vector<16x32xf32>
    %cst_67 = arith.constant dense<0.000000e+00> : vector<16xf32>
    %131 = vector.multi_reduction <add>, %130, %cst_67 [1] : vector<16x32xf32> to vector<16xf32>
    %132 = vector.shape_cast %131 : vector<16xf32> to vector<16x1xf32>
    %133 = tpu.reciprocal %132 {approx = true} : vector<16x1xf32> -> vector<16x1xf32>
    %134 = vector.broadcast %133 : vector<16x1xf32> to vector<16x32xf32>
    %135 = arith.mulf %130, %134 : vector<16x32xf32>
    %136 = vector.extract_strided_slice %75 {offsets = [0, 8], sizes = [32, 8], strides = [1, 1]} : vector<32x32xf32> to vector<32x8xf32>
    %cst_68 = arith.constant dense<0.000000e+00> : vector<16x8xf32>
    %137 = tpu.matmul %135, %136, %cst_68 {dimension_numbers = #tpu.dot_dimension_numbers<[1], [0], [0], [1], [0, 0, 1, 1], [], []>} : vector<16x32xf32>, vector<32x8xf32>, vector<16x8xf32> -> vector<16x8xf32>
    %138 = vector.extract_strided_slice %76 {offsets = [0, 16], sizes = [8, 8], strides = [1, 1]} : vector<8x32xf32> to vector<8x8xf32>
    %139 = vector.extract_strided_slice %66 {offsets = [0, 16], sizes = [8, 8], strides = [1, 1]} : vector<8x32xf32> to vector<8x8xf32>
    %cst_69 = arith.constant dense<0.000000e+00> : vector<8x8xf32>
    %140 = tpu.matmul %138, %139, %cst_69 {dimension_numbers = #tpu.dot_dimension_numbers<[1], [1], [0], [0], [0, 0, 1, 0], [], []>} : vector<8x8xf32>, vector<8x8xf32>, vector<8x8xf32> -> vector<8x8xf32>
    %cst_70 = arith.constant dense<0xFF800000> : vector<8xf32>
    %141 = vector.multi_reduction <maximumf>, %140, %cst_70 [1] : vector<8x8xf32> to vector<8xf32>
    %142 = vector.shape_cast %141 : vector<8xf32> to vector<8x1xf32>
    %143 = vector.broadcast %142 : vector<8x1xf32> to vector<8x8xf32>
    %144 = arith.subf %140, %143 : vector<8x8xf32>
    %145 = math.exp %144 : vector<8x8xf32>
    %cst_71 = arith.constant dense<0.000000e+00> : vector<8xf32>
    %146 = vector.multi_reduction <add>, %145, %cst_71 [1] : vector<8x8xf32> to vector<8xf32>
    %147 = vector.shape_cast %146 : vector<8xf32> to vector<8x1xf32>
    %148 = tpu.reciprocal %147 {approx = true} : vector<8x1xf32> -> vector<8x1xf32>
    %149 = vector.broadcast %148 : vector<8x1xf32> to vector<8x8xf32>
    %150 = arith.mulf %145, %149 : vector<8x8xf32>
    %151 = vector.extract_strided_slice %68 {offsets = [0, 16], sizes = [8, 8], strides = [1, 1]} : vector<8x32xf32> to vector<8x8xf32>
    %cst_72 = arith.constant dense<0.000000e+00> : vector<8x8xf32>
    %152 = tpu.matmul %150, %151, %cst_72 {dimension_numbers = #tpu.dot_dimension_numbers<[1], [0], [0], [1], [0, 0, 1, 1], [], []>} : vector<8x8xf32>, vector<8x8xf32>, vector<8x8xf32> -> vector<8x8xf32>
    %153 = vector.extract_strided_slice %77 {offsets = [0, 16], sizes = [16, 8], strides = [1, 1]} : vector<16x32xf32> to vector<16x8xf32>
    %154 = vector.extract_strided_slice %71 {offsets = [0, 16], sizes = [32, 8], strides = [1, 1]} : vector<32x32xf32> to vector<32x8xf32>
    %cst_73 = arith.constant dense<0.000000e+00> : vector<16x32xf32>
    %155 = tpu.matmul %153, %154, %cst_73 {dimension_numbers = #tpu.dot_dimension_numbers<[1], [1], [0], [0], [0, 0, 1, 0], [], []>} : vector<16x8xf32>, vector<32x8xf32>, vector<16x32xf32> -> vector<16x32xf32>
    %cst_74 = arith.constant dense<0xFF800000> : vector<16xf32>
    %156 = vector.multi_reduction <maximumf>, %155, %cst_74 [1] : vector<16x32xf32> to vector<16xf32>
    %157 = vector.shape_cast %156 : vector<16xf32> to vector<16x1xf32>
    %158 = vector.broadcast %157 : vector<16x1xf32> to vector<16x32xf32>
    %159 = arith.subf %155, %158 : vector<16x32xf32>
    %160 = math.exp %159 : vector<16x32xf32>
    %cst_75 = arith.constant dense<0.000000e+00> : vector<16xf32>
    %161 = vector.multi_reduction <add>, %160, %cst_75 [1] : vector<16x32xf32> to vector<16xf32>
    %162 = vector.shape_cast %161 : vector<16xf32> to vector<16x1xf32>
    %163 = tpu.reciprocal %162 {approx = true} : vector<16x1xf32> -> vector<16x1xf32>
    %164 = vector.broadcast %163 : vector<16x1xf32> to vector<16x32xf32>
    %165 = arith.mulf %160, %164 : vector<16x32xf32>
    %166 = vector.extract_strided_slice %75 {offsets = [0, 16], sizes = [32, 8], strides = [1, 1]} : vector<32x32xf32> to vector<32x8xf32>
    %cst_76 = arith.constant dense<0.000000e+00> : vector<16x8xf32>
    %167 = tpu.matmul %165, %166, %cst_76 {dimension_numbers = #tpu.dot_dimension_numbers<[1], [0], [0], [1], [0, 0, 1, 1], [], []>} : vector<16x32xf32>, vector<32x8xf32>, vector<16x8xf32> -> vector<16x8xf32>
    %168 = vector.extract_strided_slice %76 {offsets = [0, 24], sizes = [8, 8], strides = [1, 1]} : vector<8x32xf32> to vector<8x8xf32>
    %169 = vector.extract_strided_slice %66 {offsets = [0, 24], sizes = [8, 8], strides = [1, 1]} : vector<8x32xf32> to vector<8x8xf32>
    %cst_77 = arith.constant dense<0.000000e+00> : vector<8x8xf32>
    %170 = tpu.matmul %168, %169, %cst_77 {dimension_numbers = #tpu.dot_dimension_numbers<[1], [1], [0], [0], [0, 0, 1, 0], [], []>} : vector<8x8xf32>, vector<8x8xf32>, vector<8x8xf32> -> vector<8x8xf32>
    %cst_78 = arith.constant dense<0xFF800000> : vector<8xf32>
    %171 = vector.multi_reduction <maximumf>, %170, %cst_78 [1] : vector<8x8xf32> to vector<8xf32>
    %172 = vector.shape_cast %171 : vector<8xf32> to vector<8x1xf32>
    %173 = vector.broadcast %172 : vector<8x1xf32> to vector<8x8xf32>
    %174 = arith.subf %170, %173 : vector<8x8xf32>
    %175 = math.exp %174 : vector<8x8xf32>
    %cst_79 = arith.constant dense<0.000000e+00> : vector<8xf32>
    %176 = vector.multi_reduction <add>, %175, %cst_79 [1] : vector<8x8xf32> to vector<8xf32>
    %177 = vector.shape_cast %176 : vector<8xf32> to vector<8x1xf32>
    %178 = tpu.reciprocal %177 {approx = true} : vector<8x1xf32> -> vector<8x1xf32>
    %179 = vector.broadcast %178 : vector<8x1xf32> to vector<8x8xf32>
    %180 = arith.mulf %175, %179 : vector<8x8xf32>
    %181 = vector.extract_strided_slice %68 {offsets = [0, 24], sizes = [8, 8], strides = [1, 1]} : vector<8x32xf32> to vector<8x8xf32>
    %cst_80 = arith.constant dense<0.000000e+00> : vector<8x8xf32>
    %182 = tpu.matmul %180, %181, %cst_80 {dimension_numbers = #tpu.dot_dimension_numbers<[1], [0], [0], [1], [0, 0, 1, 1], [], []>} : vector<8x8xf32>, vector<8x8xf32>, vector<8x8xf32> -> vector<8x8xf32>
    %183 = vector.extract_strided_slice %77 {offsets = [0, 24], sizes = [16, 8], strides = [1, 1]} : vector<16x32xf32> to vector<16x8xf32>
    %184 = vector.extract_strided_slice %71 {offsets = [0, 24], sizes = [32, 8], strides = [1, 1]} : vector<32x32xf32> to vector<32x8xf32>
    %cst_81 = arith.constant dense<0.000000e+00> : vector<16x32xf32>
    %185 = tpu.matmul %183, %184, %cst_81 {dimension_numbers = #tpu.dot_dimension_numbers<[1], [1], [0], [0], [0, 0, 1, 0], [], []>} : vector<16x8xf32>, vector<32x8xf32>, vector<16x32xf32> -> vector<16x32xf32>
    %cst_82 = arith.constant dense<0xFF800000> : vector<16xf32>
    %186 = vector.multi_reduction <maximumf>, %185, %cst_82 [1] : vector<16x32xf32> to vector<16xf32>
    %187 = vector.shape_cast %186 : vector<16xf32> to vector<16x1xf32>
    %188 = vector.broadcast %187 : vector<16x1xf32> to vector<16x32xf32>
    %189 = arith.subf %185, %188 : vector<16x32xf32>
    %190 = math.exp %189 : vector<16x32xf32>
    %cst_83 = arith.constant dense<0.000000e+00> : vector<16xf32>
    %191 = vector.multi_reduction <add>, %190, %cst_83 [1] : vector<16x32xf32> to vector<16xf32>
    %192 = vector.shape_cast %191 : vector<16xf32> to vector<16x1xf32>
    %193 = tpu.reciprocal %192 {approx = true} : vector<16x1xf32> -> vector<16x1xf32>
    %194 = vector.broadcast %193 : vector<16x1xf32> to vector<16x32xf32>
    %195 = arith.mulf %190, %194 : vector<16x32xf32>
    %196 = vector.extract_strided_slice %75 {offsets = [0, 24], sizes = [32, 8], strides = [1, 1]} : vector<32x32xf32> to vector<32x8xf32>
    %cst_84 = arith.constant dense<0.000000e+00> : vector<16x8xf32>
    %197 = tpu.matmul %195, %196, %cst_84 {dimension_numbers = #tpu.dot_dimension_numbers<[1], [0], [0], [1], [0, 0, 1, 1], [], []>} : vector<16x32xf32>, vector<32x8xf32>, vector<16x8xf32> -> vector<16x8xf32>
    %198 = tpu.concatenate %92, %122, %152, %182 in 1 : vector<8x8xf32>, vector<8x8xf32>, vector<8x8xf32>, vector<8x8xf32> -> vector<8x32xf32>
    %199 = tpu.concatenate %107, %137, %167, %197 in 1 : vector<16x8xf32>, vector<16x8xf32>, vector<16x8xf32>, vector<16x8xf32> -> vector<16x32xf32>
    %200 = tpu.concatenate %198, %199 in 0 : vector<8x32xf32>, vector<16x32xf32> -> vector<24x32xf32>
    %c0_85 = arith.constant 0 : index
    %c0_86 = arith.constant 0 : index
    %201 = vector.load %arg7[%c0_85, %c0_86] : memref<32x32xf32, #tpu.memory_space<vmem>>, vector<32x32xf32>
    %cst_87 = arith.constant dense<0.000000e+00> : vector<24x32xf32>
    %202 = tpu.matmul %200, %201, %cst_87 {dimension_numbers = #tpu.dot_dimension_numbers<[1], [0], [0], [1], [0, 0, 1, 1], [], []>} : vector<24x32xf32>, vector<32x32xf32>, vector<24x32xf32> -> vector<24x32xf32>
    %c0_88 = arith.constant 0 : index
    %c0_89 = arith.constant 0 : index
    %203 = vector.load %arg8[%c0_88, %c0_89] : memref<1x32xf32, #tpu.memory_space<vmem>>, vector<1x32xf32>
    %204 = vector.broadcast %203 : vector<1x32xf32> to vector<24x32xf32>
    %205 = arith.addf %202, %204 : vector<24x32xf32>
    %c0_90 = arith.constant 0 : index
    %c0_91 = arith.constant 0 : index
    %206 = vector.load %arg9[%c0_90, %c0_91] : memref<32x2xf32, #tpu.memory_space<vmem>>, vector<32x2xf32>
    %cst_92 = arith.constant dense<0.000000e+00> : vector<24x2xf32>
    %207 = tpu.matmul %200, %206, %cst_92 {dimension_numbers = #tpu.dot_dimension_numbers<[1], [0], [0], [1], [0, 0, 1, 1], [], []>} : vector<24x32xf32>, vector<32x2xf32>, vector<24x2xf32> -> vector<24x2xf32>
    %cst_93 = arith.constant dense<0xFF800000> : vector<24xf32>
    %208 = vector.multi_reduction <maximumf>, %207, %cst_93 [1] : vector<24x2xf32> to vector<24xf32>
    %209 = vector.shape_cast %208 : vector<24xf32> to vector<24x1xf32>
    %210 = vector.broadcast %209 : vector<24x1xf32> to vector<24x2xf32>
    %211 = arith.subf %207, %210 : vector<24x2xf32>
    %212 = math.exp %211 : vector<24x2xf32>
    %cst_94 = arith.constant dense<0.000000e+00> : vector<24xf32>
    %213 = vector.multi_reduction <add>, %212, %cst_94 [1] : vector<24x2xf32> to vector<24xf32>
    %214 = vector.shape_cast %213 : vector<24xf32> to vector<24x1xf32>
    %215 = tpu.reciprocal %214 {approx = true} : vector<24x1xf32> -> vector<24x1xf32>
    %216 = vector.broadcast %215 : vector<24x1xf32> to vector<24x2xf32>
    %217 = arith.mulf %212, %216 : vector<24x2xf32>
    %c0_95 = arith.constant 0 : index
    %c0_96 = arith.constant 0 : index
    %218 = vector.load %arg10[%c0_95, %c0_96] : memref<32x8xf32, #tpu.memory_space<vmem>>, vector<32x8xf32>
    %cst_97 = arith.constant dense<0.000000e+00> : vector<24x8xf32>
    %219 = tpu.matmul %200, %218, %cst_97 {dimension_numbers = #tpu.dot_dimension_numbers<[1], [0], [0], [1], [0, 0, 1, 1], [], []>} : vector<24x32xf32>, vector<32x8xf32>, vector<24x8xf32> -> vector<24x8xf32>
    %c0_98 = arith.constant 0 : index
    %c0_99 = arith.constant 0 : index
    %220 = vector.load %arg12[%c0_98, %c0_99] : memref<2x8xf32, #tpu.memory_space<vmem>>, vector<2x8xf32>
    %cst_100 = arith.constant dense<0.000000e+00> : vector<24x8xf32>
    %221 = tpu.matmul %217, %220, %cst_100 {dimension_numbers = #tpu.dot_dimension_numbers<[1], [0], [0], [1], [0, 0, 1, 1], [], []>} : vector<24x2xf32>, vector<2x8xf32>, vector<24x8xf32> -> vector<24x8xf32>
    %222 = arith.mulf %219, %221 : vector<24x8xf32>
    %c0_101 = arith.constant 0 : index
    %c0_102 = arith.constant 0 : index
    %223 = vector.load %arg11[%c0_101, %c0_102] : memref<8x32xf32, #tpu.memory_space<vmem>>, vector<8x32xf32>
    %cst_103 = arith.constant dense<0.000000e+00> : vector<24x32xf32>
    %224 = tpu.matmul %222, %223, %cst_103 {dimension_numbers = #tpu.dot_dimension_numbers<[1], [0], [0], [1], [0, 0, 1, 1], [], []>} : vector<24x8xf32>, vector<8x32xf32>, vector<24x32xf32> -> vector<24x32xf32>
    %cst_104 = arith.constant 2.500000e-01 : f32
    %225 = vector.broadcast %cst_104 : f32 to vector<24x32xf32>
    %226 = arith.mulf %224, %225 : vector<24x32xf32>
    %227 = arith.addf %205, %226 : vector<24x32xf32>
    %c0_105 = arith.constant 0 : index
    %c0_106 = arith.constant 0 : index
    %c0_107 = arith.constant 0 : index
    %228 = vector.load %arg24[%c0_105, %c0_106, %c0_107] : memref<1x24x32xf32, #tpu.memory_space<vmem>>, vector<1x24x32xf32>
    %229 = vector.shape_cast %228 : vector<1x24x32xf32> to vector<24x32xf32>
    %230 = vector.shape_cast %227 : vector<24x32xf32> to vector<1x24x32xf32>
    tpu.vector_store %arg24[%c0_105, %c0_106, %c0_107], %230 {strides = array<i32>} : memref<1x24x32xf32, #tpu.memory_space<vmem>>, vector<1x24x32xf32>,
    %c0_108 = arith.constant 0 : index
    %c0_109 = arith.constant 0 : index
    %c0_110 = arith.constant 0 : index
    %231 = vector.load %arg25[%c0_108, %c0_109, %c0_110] : memref<1x8x32xf32, #tpu.memory_space<vmem>>, vector<1x8x32xf32>
    %232 = vector.shape_cast %231 : vector<1x8x32xf32> to vector<8x32xf32>
    %233 = vector.shape_cast %66 : vector<8x32xf32> to vector<1x8x32xf32>
    tpu.vector_store %arg25[%c0_108, %c0_109, %c0_110], %233 {strides = array<i32>} : memref<1x8x32xf32, #tpu.memory_space<vmem>>, vector<1x8x32xf32>,
    %c0_111 = arith.constant 0 : index
    %c0_112 = arith.constant 0 : index
    %c0_113 = arith.constant 0 : index
    %234 = vector.load %arg26[%c0_111, %c0_112, %c0_113] : memref<1x8x32xf32, #tpu.memory_space<vmem>>, vector<1x8x32xf32>
    %235 = vector.shape_cast %234 : vector<1x8x32xf32> to vector<8x32xf32>
    %236 = vector.shape_cast %68 : vector<8x32xf32> to vector<1x8x32xf32>
    tpu.vector_store %arg26[%c0_111, %c0_112, %c0_113], %236 {strides = array<i32>} : memref<1x8x32xf32, #tpu.memory_space<vmem>>, vector<1x8x32xf32>,
    return
  }
  func.func @transform_0(%arg0: i32) -> (i32, i32, i32) {
    %c0_i32 = arith.constant 0 : i32
    %c0_i32_0 = arith.constant 0 : i32
    %c0_i32_1 = arith.constant 0 : i32
    return %arg0, %c0_i32, %c0_i32_0 : i32, i32, i32
  }
  func.func @transform_1(%arg0: i32) -> (i32, i32, i32) {
    %c0_i32 = arith.constant 0 : i32
    %c0_i32_0 = arith.constant 0 : i32
    %c0_i32_1 = arith.constant 0 : i32
    return %arg0, %c0_i32, %c0_i32_0 : i32, i32, i32
  }
  func.func @transform_2(%arg0: i32) -> (i32, i32, i32) {
    %c0_i32 = arith.constant 0 : i32
    %c0_i32_0 = arith.constant 0 : i32
    %c0_i32_1 = arith.constant 0 : i32
    return %arg0, %c0_i32, %c0_i32_0 : i32, i32, i32
  }
  func.func @transform_3(%arg0: i32) -> (i32, i32, i32) {
    %c0_i32 = arith.constant 0 : i32
    %c0_i32_0 = arith.constant 0 : i32
    %c0_i32_1 = arith.constant 0 : i32
    return %arg0, %c0_i32, %c0_i32_0 : i32, i32, i32
  }
  func.func @transform_4(%arg0: i32) -> (i32, i32) {
    %c0_i32 = arith.constant 0 : i32
    %c0_i32_0 = arith.constant 0 : i32
    %c0_i32_1 = arith.constant 0 : i32
    return %c0_i32, %c0_i32_0 : i32, i32
  }
  func.func @transform_5(%arg0: i32) -> (i32, i32) {
    %c0_i32 = arith.constant 0 : i32
    %c0_i32_0 = arith.constant 0 : i32
    %c0_i32_1 = arith.constant 0 : i32
    return %c0_i32, %c0_i32_0 : i32, i32
  }
  func.func @transform_6(%arg0: i32) -> (i32, i32) {
    %c0_i32 = arith.constant 0 : i32
    %c0_i32_0 = arith.constant 0 : i32
    %c0_i32_1 = arith.constant 0 : i32
    return %c0_i32, %c0_i32_0 : i32, i32
  }
  func.func @transform_7(%arg0: i32) -> (i32, i32) {
    %c0_i32 = arith.constant 0 : i32
    %c0_i32_0 = arith.constant 0 : i32
    %c0_i32_1 = arith.constant 0 : i32
    return %c0_i32, %c0_i32_0 : i32, i32
  }
  func.func @transform_8(%arg0: i32) -> (i32, i32) {
    %c0_i32 = arith.constant 0 : i32
    %c0_i32_0 = arith.constant 0 : i32
    %c0_i32_1 = arith.constant 0 : i32
    return %c0_i32, %c0_i32_0 : i32, i32
  }
  func.func @transform_9(%arg0: i32) -> (i32, i32) {
    %c0_i32 = arith.constant 0 : i32
    %c0_i32_0 = arith.constant 0 : i32
    %c0_i32_1 = arith.constant 0 : i32
    return %c0_i32, %c0_i32_0 : i32, i32
  }
  func.func @transform_10(%arg0: i32) -> (i32, i32) {
    %c0_i32 = arith.constant 0 : i32
    %c0_i32_0 = arith.constant 0 : i32
    %c0_i32_1 = arith.constant 0 : i32
    return %c0_i32, %c0_i32_0 : i32, i32
  }
  func.func @transform_11(%arg0: i32) -> (i32, i32) {
    %c0_i32 = arith.constant 0 : i32
    %c0_i32_0 = arith.constant 0 : i32
    %c0_i32_1 = arith.constant 0 : i32
    return %c0_i32, %c0_i32_0 : i32, i32
  }
  func.func @transform_12(%arg0: i32) -> (i32, i32) {
    %c0_i32 = arith.constant 0 : i32
    %c0_i32_0 = arith.constant 0 : i32
    %c0_i32_1 = arith.constant 0 : i32
    return %c0_i32, %c0_i32_0 : i32, i32
  }
  func.func @transform_13(%arg0: i32) -> (i32, i32) {
    %c0_i32 = arith.constant 0 : i32
    %c0_i32_0 = arith.constant 0 : i32
    %c0_i32_1 = arith.constant 0 : i32
    return %c0_i32, %c0_i32_0 : i32, i32
  }
  func.func @transform_14(%arg0: i32) -> (i32, i32) {
    %c0_i32 = arith.constant 0 : i32
    %c0_i32_0 = arith.constant 0 : i32
    %c0_i32_1 = arith.constant 0 : i32
    return %c0_i32, %c0_i32_0 : i32, i32
  }
  func.func @transform_15(%arg0: i32) -> (i32, i32) {
    %c0_i32 = arith.constant 0 : i32
    %c0_i32_0 = arith.constant 0 : i32
    %c0_i32_1 = arith.constant 0 : i32
    return %c0_i32, %c0_i32_0 : i32, i32
  }
  func.func @transform_16(%arg0: i32) -> (i32, i32) {
    %c0_i32 = arith.constant 0 : i32
    %c0_i32_0 = arith.constant 0 : i32
    %c0_i32_1 = arith.constant 0 : i32
    return %c0_i32, %c0_i32_0 : i32, i32
  }
  func.func @transform_17(%arg0: i32) -> (i32, i32) {
    %c0_i32 = arith.constant 0 : i32
    %c0_i32_0 = arith.constant 0 : i32
    %c0_i32_1 = arith.constant 0 : i32
    return %c0_i32, %c0_i32_0 : i32, i32
  }
  func.func @transform_18(%arg0: i32) -> (i32, i32) {
    %c0_i32 = arith.constant 0 : i32
    %c0_i32_0 = arith.constant 0 : i32
    %c0_i32_1 = arith.constant 0 : i32
    return %c0_i32, %c0_i32_0 : i32, i32
  }
  func.func @transform_19(%arg0: i32) -> (i32, i32) {
    %c0_i32 = arith.constant 0 : i32
    %c0_i32_0 = arith.constant 0 : i32
    %c0_i32_1 = arith.constant 0 : i32
    return %c0_i32, %c0_i32_0 : i32, i32
  }
  func.func @transform_20(%arg0: i32) -> (i32, i32) {
    %c0_i32 = arith.constant 0 : i32
    %c0_i32_0 = arith.constant 0 : i32
    %c0_i32_1 = arith.constant 0 : i32
    return %c0_i32, %c0_i32_0 : i32, i32
  }
  func.func @transform_21(%arg0: i32) -> (i32, i32) {
    %c0_i32 = arith.constant 0 : i32
    %c0_i32_0 = arith.constant 0 : i32
    %c0_i32_1 = arith.constant 0 : i32
    return %c0_i32, %c0_i32_0 : i32, i32
  }
  func.func @transform_22(%arg0: i32) -> (i32, i32) {
    %c0_i32 = arith.constant 0 : i32
    %c0_i32_0 = arith.constant 0 : i32
    %c0_i32_1 = arith.constant 0 : i32
    return %c0_i32, %c0_i32_0 : i32, i32
  }
  func.func @transform_23(%arg0: i32) -> (i32, i32, i32) {
    %c0_i32 = arith.constant 0 : i32
    %c0_i32_0 = arith.constant 0 : i32
    %c0_i32_1 = arith.constant 0 : i32
    return %arg0, %c0_i32, %c0_i32_0 : i32, i32, i32
  }
  func.func @transform_24(%arg0: i32) -> (i32, i32, i32) {
    %c0_i32 = arith.constant 0 : i32
    %c0_i32_0 = arith.constant 0 : i32
    %c0_i32_1 = arith.constant 0 : i32
    return %arg0, %c0_i32, %c0_i32_0 : i32, i32, i32
  }
  func.func @transform_25(%arg0: i32) -> (i32, i32, i32) {
    %c0_i32 = arith.constant 0 : i32
    %c0_i32_0 = arith.constant 0 : i32
    %c0_i32_1 = arith.constant 0 : i32
    return %arg0, %c0_i32, %c0_i32_0 : i32, i32, i32
  }
}

</mosaic_0001>

<bundles_post_ra>
// kernel: tpu_custom_call.1
= control target key start
LH: loop header
LB: loop body
LE: loop exit
PB: predicated region body
PF: predicated region fallthrough
CT: control target
= control target key end

     0   :  { %s5825_s0 = inlined_call_operand.vmem [shape: f32[2,24,32], index: 0, kind: input, shape index: {}]   ;;  %s5826_s1 = inlined_call_operand.vmem [shape: f32[2,8,32], index: 1, kind: input, shape index: {}]   ;;  %s5827_s2 = inlined_call_operand.vmem [shape: f32[2,8,32], index: 2, kind: input, shape index: {}]   ;;  %s5828_s3 = inlined_call_operand.vmem [shape: f32[2,8,32], index: 3, kind: input, shape index: {}]   ;;  %s5829_s4 = inlined_call_operand.vmem [shape: f32[32,96], index: 4, kind: input, shape index: {}]   ;;  %s5830_s5 = inlined_call_operand.vmem [shape: f32[1,96], index: 5, kind: input, shape index: {}]   ;;  %s5831_s6 = inlined_call_operand.vmem [shape: f32[32,32], index: 6, kind: input, shape index: {}]   ;;  %s5832_s7 = inlined_call_operand.vmem [shape: f32[1,32], index: 7, kind: input, shape index: {}]   ;;  %s5833_s8 = inlined_call_operand.vmem [shape: f32[32,2], index: 8, kind: input, shape index: {}]   ;;  %s5834_s9 = inlined_call_operand.vmem [shape: f32[32,8], index: 9, kind: input, shape index: {}]   ;;  %s5835_s10 = inlined_call_operand.vmem [shape: f32[8,32], index: 10, kind: input, shape index: {}]   ;;  %s5836_s11 = inlined_call_operand.vmem [shape: f32[2,8], index: 11, kind: input, shape index: {}]   ;;  %s5837_s12 = inlined_call_operand.vmem [shape: f32[4,32], index: 12, kind: input, shape index: {}]   ;;  %s5838_s13 = inlined_call_operand.vmem [shape: f32[32,4], index: 13, kind: input, shape index: {}]   ;;  %s5839_s14 = inlined_call_operand.vmem [shape: f32[1,4], index: 14, kind: input, shape index: {}]   ;;  %s5840_s15 = inlined_call_operand.vmem [shape: f32[32,1], index: 15, kind: input, shape index: {}]   ;;  %s5841_s16 = inlined_call_operand.vmem [shape: f32[32,4], index: 16, kind: input, shape index: {}]   ;;  %s5842_s17 = inlined_call_operand.vmem [shape: f32[4,4], index: 17, kind: input, shape index: {}]   ;;  %s5843_s18 = inlined_call_operand.vmem [shape: f32[32,32], index: 18, kind: input, shape index: {}]   ;;  %s5844_s19 = inlined_call_operand.vmem [shape: f32[1,32], index: 19, kind: input, shape index: {}]   ;;  %s5845_s20 = inlined_call_operand.vmem [shape: f32[32,1], index: 20, kind: input, shape index: {}]   ;;  %s5846_s21 = inlined_call_operand.vmem [shape: f32[32,4], index: 21, kind: input, shape index: {}]   ;;  %s5847_s22 = inlined_call_operand.vmem [shape: f32[4,32], index: 22, kind: input, shape index: {}]   ;;  %s5848_s23 = inlined_call_operand.hbm [shape: f32[2,24,32], index: 23, kind: output, shape index: {0}]   ;;  %s5849_s24 = inlined_call_operand.hbm [shape: f32[2,8,32], index: 24, kind: output, shape index: {1}]   ;;  %s5850_s25 = inlined_call_operand.hbm [shape: f32[2,8,32], index: 25, kind: output, shape index: {2}]  }
   0x1   :  { %5869 = sst [smem:[#allocation15_spill]] %s5825_s0 }
   0x2   :  { %5870 = sst [smem:[#allocation16_spill]] %s5826_s1 }
   0x3   :  { %5871 = sst [smem:[#allocation17_spill]] %s5827_s2 }
   0x4   :  { %5872 = sst [smem:[#allocation18_spill]] %s5828_s3 }
   0x5   :  { %5873 = sst [smem:[#allocation19_spill]] %s5829_s4 }
   0x6   :  { %5874 = sst [smem:[#allocation20_spill]] %s5830_s5 }
   0x7   :  { %5875 = sst [smem:[#allocation21_spill]] %s5831_s6 }
   0x8   :  { %5876 = sst [smem:[#allocation22_spill]] %s5832_s7 }
   0x9   :  { %5877 = sst [smem:[#allocation23_spill]] %s5833_s8 }
   0xa   :  { %5878 = sst [smem:[#allocation24_spill]] %s5834_s9 }
   0xb   :  { %5879 = sst [smem:[#allocation25_spill]] %s5837_s12 }
   0xc   :  { %5880 = sst [smem:[#allocation26_spill]] %s5838_s13 }
   0xd   :  { %5881 = sst [smem:[#allocation27_spill]] %s5839_s14 }
   0xe   :  { %5882 = sst [smem:[#allocation28_spill]] %s5840_s15 }
   0xf   :  { %5883 = sst [smem:[#allocation29_spill]] %s5848_s23 }
  0x10   :  { %31 = vsyncpa [#allocation3], 0 }
  0x11   :  { %33 = vsyncpa [#allocation3 + $0x1], 0 }
  0x12   :  { %34 = vsyncpa [#allocation5], 0 }
  0x13   :  { %36 = vsyncpa [#allocation5 + $0x1], 0  ;;  %s5101_s29 = smov 0   ;;  %s5103_s2 = smov 0  }
  0x14   :  { %s5105_s6 = smov 0   ;;  %s5107_s30 = smov 0  }
  0x15 LB: > { %5884 = sst [smem:[#allocation9_spill]] %s4934_s29  ;;  %s5122_s7 = sadd.s32 4294967295, %s4946_s30   ;;  %s4946_s30 = sphi %s5107_s30, %s5916_s30   ;;  %s4942_s6 = sphi %s5105_s6, %s5918_s6   ;;  %s4938_s2 = sphi %s5103_s2, %s5920_s2   ;;  %s4934_s29 = sphi %s5101_s29, %s5919_s29  }
  0x16   : > { %5885 = sst [smem:[#allocation10_spill]] %s4942_s6  ;;  %s5855_s3 = sadd.s32 4294967294, %s4946_s30  }
  0x17   : > { %5886 = sst [smem:[#allocation11_spill]] %s4946_s30  ;;  %s5126_s26 = sadd.s32 1, %s4946_s30  }
  0x18   : > { %5887 = sst [smem:[#allocation12_spill]] %s5126_s26  ;;  %s552_s1 = sadd.s32 1, %s4942_s6 }
  0x19   : > { %s549_s8 = ssub.s32 %s4946_s30, %s5126_s26  ;;  %p562_p0 = scmp.ne.s32.totalorder %s4942_s6, %s4938_s2 }
  0x1a   : > { %p550_p1 = scmp.eq.s32.totalorder %s549_s8, 0  ;;  %p563_p2 = scmp.eq.s32.totalorder %s5122_s7, 1 }
  0x1b   : > { %p568_p3 = scmp.ne.s32.totalorder %s4938_s2, %s4934_s29  ;;  %p569_p4 = scmp.eq.s32.totalorder %s5855_s3, 1 }
  0x1c   : > { %s5139_s27 = scalar_select %p550_p1, %s4942_s6, %s552_s1  }
  0x1d   : > { %p5141_p5 = por %p563_p2, %p562_p0  ;;  %p5145_p6 = por %p569_p4, %p568_p3 }
  0x1e   : > { %5888 = sst [smem:[#allocation13_spill]] %s5139_s27  ;;  %p3943_p7 = scmp.ge.s32.totalorder %s4946_s30, 1 }
  0x1f   : > { %s5890_s28 = scalar_select %p5145_p6, 1, 0 }
  0x20   : > { %p725_p8 = scmp.lt.s32.totalorder %s4946_s30, 3 }
  0x21   : > { %5891 = sst [smem:[#allocation14_spill]] %s5890_s28 }
  0x22   : > { %p726_p9 = pnand %p3943_p7, %p725_p8 }
  0x23   : > { %s5892_s13 = sld [smem:[#allocation26_spill]] (!%p726_p9)  ;;  %v4948_v3 = vmov (!%p726_p9), 0.0|0.0   ;;  %vm4949_vm0 = vmmov (!%p726_p9), 0   ;;  %v4950_v6 = vmov (!%p726_p9), 0.0   ;;  %p815_p10 = scmp.lt.s32.totalorder (!%p726_p9), %s5122_s7, 1  ;;  %vm846_vm1 = vcmask (!%p726_p9), 261120  }
  0x24   : > { %729 = sbr.rel (%p726_p9) target bundleno = 4869 (0x1305), region = 112  ;;  %4477 = vmatprep.subr.bf16.mxu1 (!%p726_p9), %v4948_v3  ;;  %4197 = vmatprep.mubr.msk.f32.mxu1 (!%p726_p9), %vm4949_vm0, %v4950_v6  ;;  %s5893_s3 = sld [smem:[#allocation19_spill]] (!%p726_p9)  ;;  %v1101_v18 = vld [vmem:[%s5841_s16] sm:$0xff] (!%p726_p9)  ;;  %v1102_v19 = vld [vmem:[%s5841_s16 + $0x8] sm:$0xff] (!%p726_p9)  ;;  %v1103_v25 = vld [vmem:[%s5841_s16 + $0x10] sm:$0xff] (!%p726_p9)  ;;  %v4951_v30 = vmov (!%p726_p9), 0  }
  0x25   : > { %4471 = vmatprep.subr.bf16.mxu0 (!%p726_p9), %v4948_v3  ;;  %4180 = vmatprep.mubr.msk.f32.mxu0 (!%p726_p9), %vm4949_vm0, %v4950_v6  ;;  %s5894_s15 = sld [smem:[#allocation28_spill]] (!%p726_p9)  ;;  %s5895_s30 = sld [smem:[#allocation16_spill]] (!%p726_p9)  ;;  %v4490_v23 = vpack.c.bf16 (!%p726_p9), %v1102_v19, %v1101_v18  ;;  %v1104_v26 = vld [vmem:[%s5841_s16 + $0x18] sm:$0xff] (!%p726_p9)  ;;  %v1181_v31 = vld [vmem:[%s5842_s17] sm:$0xf] (!%p726_p9)  ;;  %vm1186_vm2 = vcmask (!%p726_p9), 1043456  }
  0x26   : > { %s5896_s28 = sld [smem:[#allocation15_spill]] (!%p726_p9)  ;;  %v4493_v28 = vpack.c.bf16 (!%p726_p9), %v1104_v26, %v1103_v25  ;;  %4683 = vset.pattern.permute.xlu0 (!%p726_p9), %v4951_v30  ;;  %v1262_v52 = vld [vmem:[%s5843_s18] sm:$0xff] (!%p726_p9)  ;;  %v1263_v53 = vld [vmem:[%s5843_s18 + $0x8] sm:$0xff] (!%p726_p9)  ;;  %v1264_v54 = vld [vmem:[%s5843_s18 + $0x10] sm:$0xff] (!%p726_p9)  ;;  %vm1182_vm3 = vcmask (!%p726_p9), 31744   ;;  %s5898_s14 = sld [smem:[#allocation27_spill]] (!%p726_p9) }
  0x27   : > { %v4496_v55 = vpack.c.bf16 (!%p726_p9), %v1263_v53, %v1262_v52  ;;  %v1265_v56 = vld [vmem:[%s5843_s18 + $0x18] sm:$0xff] (!%p726_p9)  ;;  %v1423_v58 = vld [vmem:[%s5846_s21] sm:$0xff] (!%p726_p9)  ;;  %v1424_v59 = vld [vmem:[%s5846_s21 + $0x8] sm:$0xff] (!%p726_p9)  ;;  %s4952_s8 = smov (!%p726_p9), 96   ;;  %s5899_s12 = sld [smem:[#allocation25_spill]] (!%p726_p9)  ;;  %vm1695_vm4 = vcmask (!%p726_p9), 64512  }
  0x28   : > { %v4499_v57 = vpack.c.bf16 (!%p726_p9), %v1265_v56, %v1264_v54  ;;  %v4508_v60 = vpack.c.bf16 (!%p726_p9), %v1424_v59, %v1423_v58  ;;  %v1425_v61 = vld [vmem:[%s5846_s21 + $0x10] sm:$0xff] (!%p726_p9)  ;;  %v1426_v62 = vld [vmem:[%s5846_s21 + $0x18] sm:$0xff] (!%p726_p9)  ;;  %s4953_s29 = smov (!%p726_p9), 32   ;;  %s5359_s26 = sand.u32 (!%p726_p9), 1, %s4938_s2   ;;  %vm5368_vm5 = vmpackc.low (!%p726_p9), %vm1695_vm4, %vm1695_vm4  ;;  %vm3196_vm6 = vcmask (!%p726_p9), 130048   ;;  %vm3198_vm7 = vcmask (!%p726_p9), 195584  }
  0x29   : > { %v937_v0 = vld [vmem:[%s5892_s13] sm:$0xff] (!%p726_p9)  ;;  %v938_v1 = vld [vmem:[%s5892_s13 + $0x8] sm:$0xff] (!%p726_p9)  ;;  %v939_v2 = vld [vmem:[%s5892_s13 + $0x10] sm:$0xff] (!%p726_p9)  ;;  %v4511_v63 = vpack.c.bf16 (!%p726_p9), %v1426_v62, %v1425_v61  ;;  %s5900_s5 = sld [smem:[#allocation17_spill]] (!%p726_p9)  ;;  %s3944_s1 = sshll.u32 (!%p726_p9), %s5359_s26, 3  ;;  %vm3414_vm8 = vcmask (!%p726_p9), 15360  }
  0x2a   : > { %v4478_v4 = vpack.c.bf16 (!%p726_p9), %v938_v1, %v937_v0  ;;  %v940_v5 = vld [vmem:[%s5892_s13 + $0x18] sm:$0xff] (!%p726_p9)  ;;  %v835_v7 = vld [vmem:[%s5893_s3] sm:$0xff] (!%p726_p9)  ;;  %v836_v9 = vld [vmem:[%s5893_s3 + $0x8] sm:$0xff] (!%p726_p9)  ;;  %s5865_s23 = smov (!%p726_p9), 16   ;;  %vm3542_vm9 = vcmask (!%p726_p9), 1041408  }
  0x2b   : > { %v4481_v8 = vpack.c.bf16 %v940_v5, %v939_v2  ;;  %s816_s0 = scalar_select %p815_p10, %s5122_s7, 1  ;;  %v837_v10 = vld [vmem:[%s5893_s3 + $0x10] sm:$0xff]  ;;  %v838_v11 = vld [vmem:[%s5893_s3 + $0x18] sm:$0xff]  ;;  %v1021_v12 = vld [vmem:[%s5894_s15] sm:$0xff]  ;;  %v4472_v14 = vpack.c.bf16 %v836_v9, %v835_v7 }
  0x2c   : > { %4479 = vmatpush3.bf16.msra.mxu1 %v4478_v4  ;;  %v1022_v13 = vld [vmem:[%s5894_s15 + $0x8] sm:$0xff]  ;;  %v4475_v15 = vpack.c.bf16 %v838_v11, %v837_v10  ;;  %v1023_v20 = vld [vmem:[%s5894_s15 + $0x10] sm:$0xff]  ;;  %v1024_v21 = vld [vmem:[%s5894_s15 + $0x18] sm:$0xff]  ;;  %s4956_s3 = smov 88   ;;  %s5908_s15 = smov 16  }
  0x2d   : > { %4480 = vmatprep.subr.bf16.mxu1 %v4948_v3  ;;  %s5190_s6 = sshll.u32 %s816_s0, 3  ;;  %s4612_s27 = smul.u32 24, %s816_s0  ;;  %4473 = vmatpush3.bf16.msra.mxu0 %v4472_v14  ;;  %v4484_v17 = vpack.c.bf16 %v1022_v13, %v1021_v12  ;;  %v4487_v24 = vpack.c.bf16 %v1024_v21, %v1023_v20  ;;  %v1343_v0 = vld [vmem:[%s5845_s20] sm:$0xff]  ;;  %v1344_v1 = vld [vmem:[%s5845_s20 + $0x8] sm:$0xff]  ;;  %v1345_v7 = vld [vmem:[%s5845_s20 + $0x10] sm:$0xff] }
  0x2e   : > { %s823_s13 = scalar_lea.vmem %s5895_s30, %s5190_s6  ;;  %4474 = vmatprep.subr.bf16.mxu0 %v4948_v3  ;;  %s5897_s0 = sld [smem:[#allocation20_spill]]  ;;  %v4502_v4 = vpack.c.bf16 %v1344_v1, %v1343_v0  ;;  %v1503_v11 = vld [vmem:[%s5847_s22] sm:$0xf] }
  0x2f   : > { %v5196_v16 = vld [vmem:[%s823_s13] sm:$0xff]  ;;  %s819_s9 = scalar_lea.vmem %s5896_s28, %s4612_s27  ;;  %s5374_s30 = scalar_lea.vmem [#allocation4], %s3944_s1 }
  0x30   : > { %4482 = vmatpush3.bf16.msra.mxu1 %v4481_v8  ;;  %v832_v22 = vld [vmem:[%s819_s9] sm:$0xff]  ;;  %v833_v27 = vld [vmem:[%s819_s9 + $0x8] sm:$0xff]  ;;  %v834_v29 = vld [vmem:[%s819_s9 + $0x10] sm:$0xff]  ;;  %s4955_s13 = smov 120   ;;  %s5440_s9 = scalar_lea.vmem [#allocation6], %s3944_s1 }
  0x31   : > { %4483 = vmatprep.subr.bf16.mxu1 %v4948_v3  ;;  %4476 = vmatpush3.bf16.msra.mxu0 %v4475_v15  ;;  %v1346_v8 = vld [vmem:[%s5845_s20 + $0x18] sm:$0xff]  ;;  %v3954_v15 = vld [vmem:[%s5898_s14] ss:$0 sm:$0xff]  ;;  %s4960_s1 = smov 104   ;;  %s5866_s27 = smov 8  }
  0x32   : > { %4489 = vmatprep.subr.bf16.mxu0 %v4948_v3  ;;  %v4505_v9 = vpack.c.bf16 %v1346_v8, %v1345_v7  ;;  %s5907_s14 = smov 8  }
  0x33   : > { %4198 = vmatmul.mubr.msk.f32.vlgmr.msra.gmra.mrb[0].mxu1 %vm846_vm1, %v5196_v16 }
  0x34   : > { %4485 = vmatpush3.bf16.msra.mxu1 %v4484_v17  ;;  %4208 = vmatprep.mubr.msk.f32.mxu1 %vm4949_vm0, %v4950_v6  ;;  %v5259_v36 = vld [vmem:[%s5897_s0] ss:$0 sm:$0xff]  ;;  %s827_s0 = scalar_lea.vmem %s5900_s5, %s5190_s6  ;;  %s4958_s5 = smov 112  }
  0x35   : > { %4486 = vmatprep.subr.bf16.mxu1 %v4948_v3  ;;  %4181 = vmatmul.mubr.msk.f32.vlgmr.msra.gmra.mrb[0].mxu0 %vm846_vm1, %v832_v22 }
  0x36   : > { %4183 = vmatprep.mubr.msk.f32.mxu0 %vm4949_vm0, %v4950_v6  ;;  %4491 = vmatpush3.bf16.msra.mxu0 %v4490_v23 }
  0x37   : > { %4492 = vmatprep.subr.bf16.mxu0 %v4948_v3 }
  0x38   : > { %4488 = vmatpush3.bf16.msra.mxu1 %v4487_v24 }
  0x39   : > { %4222 = vmatprep.subr.mxu1 %v4950_v6  ;;  %4184 = vmatmul.mubr.msk.f32.gmra.mrb[2].mxu0 %vm846_vm1, %v833_v27 }
  0x3a   : > { %4186 = vmatprep.mubr.msk.f32.mxu0 %vm4949_vm0, %v4950_v6  ;;  %4494 = vmatpush3.bf16.msra.mxu0 %v4493_v28 }
  0x3b   : > { %4209 = vmatmul.mubr.msk.f32.vlgmr.msra.gmra.mrb[2].mxu1 %vm846_vm1, %v5196_v16  ;;  %4495 = vmatprep.subr.bf16.mxu0 %v4948_v3 }
  0x3c   : > { %4224 = vmatprep.mubr.msk.f32.mxu1 %vm4949_vm0, %v4950_v6  ;;  %4223 = vmatpush3.msk.msra.mxu1 %vm1186_vm2, %v1181_v31  ;;  %v1584_v31 = vld [vmem:[%s5899_s12] sm:$0xf]  ;;  %s4966_s12 = smov 24  }
  0x3d   : > { %4187 = vmatmul.mubr.msk.f32.gmra.mrb[4].mxu0 %vm846_vm1, %v834_v29  ;;  %4501 = vmatprep.subr.bf16.mxu1 %v4948_v3 }
  0x3e   : > { %4219 = vmatprep.mubr.msk.f32.mxu0 %vm4949_vm0, %v4950_v6 }
  0x41   : > { %4220 = vmatmul.mubr.msk.f32.vlgmr.msra.gmra.mrb[6].mxu0 %vm846_vm1, %v5196_v16 }
  0x42   : > { %4235 = vmatprep.mubr.msk.f32.mxu0 %vm4949_vm0, %v4950_v6  ;;  %4497 = vmatpush3.bf16.msra.mxu0 %v4496_v55 }
  0x43   : > { %4498 = vmatprep.subr.bf16.mxu0 %v4948_v3 }
  0x46   : > { %4500 = vmatpush3.bf16.msra.mxu0 %v4499_v57 }
  0x47   : > { %4507 = vmatprep.subr.bf16.mxu0 %v4948_v3 }
  0x49   : > { %4236 = vmatmul.mubr.msk.f32.vlgmr.msra.gmra.mrb[8].mxu0 %vm846_vm1, %v5196_v16 }
  0x4a   : > { %4509 = vmatpush3.bf16.msra.mxu0 %v4508_v60  ;;  %4257 = vmatprep.mubr.msk.f32.mxu0 %vm4949_vm0, %v4950_v6 }
  0x4b   : > { %4510 = vmatprep.subr.bf16.mxu0 %v4948_v3 }
  0x4e   : > { %4512 = vmatpush3.bf16.msra.mxu0 %v4511_v63 }
  0x4f   : > { %4270 = vmatprep.subr.mxu0 %v4950_v6 }
  0x51   : > { %4258 = vmatmul.mubr.msk.f32.vlgmr.msra.gmra.mrb[10].mxu0 %vm846_vm1, %v5196_v16 }
  0x52   : > { %4272 = vmatprep.mubr.msk.f32.mxu0 %vm4949_vm0, %v4950_v6 }
 0x106   : > { %v5252_v32 = vpop.f32.mrb[0].mxu1 }
 0x107   : > { %v4199_v33 = vpop.f32.mrb[1].mxu1  ;;  %v1018_v17 = vadd.f32 %v3954_v15, %v5252_v32 }
 0x108   : > { %v5254_v34 = vpop.f32.mrb[0].mxu0 }
 0x109   : > { %v4182_v35 = vpop.f32.mrb[1].mxu0  ;;  %v5335_v28 = vadd.f32 %v5259_v36, %v5254_v34  ;;  %v3960_v34 = vld [vmem:[%s5844_s19] ss:$0 sm:$0xff] }
 0x10c   : > { %v927_v37 = vpop.f32.mrb[2].mxu0 }
 0x10d   : > { %v5262_v39 = vadd.f32 %v5259_v36, %v927_v37  ;;  %v4185_v40 = vpop.f32.mrb[3].mxu0 }
 0x10e   : > { %v1091_v38 = vpop.f32.mrb[2].mxu1 }
 0x10f   : > { %v1095_v41 = vsub.f32 %v1091_v38, %v1091_v38  ;;  %v4210_v42 = vpop.f32.mrb[3].mxu1 }
 0x110   : > { %v932_v44 = vpop.f32.mrb[4].mxu0 }
 0x111   : > { %v1096_v43 = vmul.f32 1.442695, %v1095_v41  ;;  %v5265_v45 = vadd.f32 %v5259_v36, %v932_v44  ;;  %v4188_v46 = vpop.f32.mrb[5].mxu0 }
 0x113   : > { %4754 = vpow2.f32 %v1096_v43  ;;  %v4684_v46 = vpack.i.bf16 %v5265_v45, %v5262_v39 }
 0x114   : > { %v1171_v47 = vpop.f32.mrb[6].mxu0 }
 0x115   : > { %v4221_v48 = vpop.f32.mrb[7].mxu0 }
 0x11c   : > { %v1339_v10 = vpop.f32.mrb[8].mxu0 }
 0x11d   : > { %v4755_v49 = vpop.eup %4754  ;;  %v4237_v12 = vpop.f32.mrb[9].mxu0  ;;  %v1340_v36 = vadd.f32 %v3960_v34, %v1339_v10 }
 0x11e   : > { %4756 = vrcp.f32 %v4755_v49 }
 0x124   : > { %v1493_v13 = vpop.f32.mrb[10].mxu0 }
 0x125   : > { %v4259_v14 = vpop.f32.mrb[11].mxu0 }
 0x128   : > { %v4757_v50 = vpop.eup %4756 }
 0x129   : > { %v1100_v51 = vmul.f32 %v4757_v50, %v4755_v49 }
 0x12b   : > { %1177 = vperm.xlu0 %4683, %v1100_v51  }
 0x1aa   : > { %v1178_v2 = vpop.permute.xlu0 %1177 }
 0x1ab   : > { %v1180_v5 = vmul.f32 %v1178_v2, %v1171_v47  ;;  %v1671_v47 = vld [vmem:[%s827_s0] sm:$0xff]  ;;  %s4959_s0 = smov 80  }
 0x1ad   : > { %4225 = vmatmul.mubr.msk.f32.vlgmr.msra.gmra.mrb[4].mxu1 %vm1182_vm3, %v1180_v5 }
 0x1ae   : > { %4503 = vmatpush3.bf16.msra.mxu1 %v4502_v4  ;;  %4246 = vmatprep.mubr.msk.f32.mxu1 %vm4949_vm0, %v4950_v6 }
 0x1af   : > { %4504 = vmatprep.subr.bf16.mxu1 %v4948_v3 }
 0x1b2   : > { %4506 = vmatpush3.bf16.msra.mxu1 %v4505_v9 }
 0x1b3   : > { %4260 = vmatprep.subr.mxu1 %v4950_v6 }
 0x1b5   : > { %4247 = vmatmul.mubr.msk.f32.vlgmr.msra.gmra.mrb[6].mxu1 %vm846_vm1, %v5196_v16 }
 0x1b6   : > { %4262 = vmatprep.mubr.msk.f32.mxu1 %vm4949_vm0, %v4950_v6  ;;  %4261 = vmatpush3.msk.msra.mxu1 %vm1186_vm2, %v1503_v11 }
 0x1b7   : > { %4265 = vmatprep.subr.mxu1 %v4950_v6 }
 0x280   : > { %v1256_v16 = vpop.f32.mrb[4].mxu1 }
 0x281   : > { %v1260_v18 = vmul.f32 0.25, %v1256_v16  ;;  %v4226_v19 = vpop.f32.mrb[5].mxu1 }
 0x283   : > { %v1261_v20 = vadd.f32 %v1260_v18, %v1018_v17 }
 0x288   : > { %v1413_v21 = vpop.f32.mrb[6].mxu1 }
 0x289   : > { %v1417_v22 = vsub.f32 %v1413_v21, %v1413_v21  ;;  %v4248_v23 = vpop.f32.mrb[7].mxu1 }
 0x28b   : > { %v1418_v24 = vmul.f32 1.442695, %v1417_v22 }
 0x28d   : > { %4758 = vpow2.f32 %v1418_v24 }
 0x297   : > { %v4759_v25 = vpop.eup %4758 }
 0x298   : > { %4760 = vrcp.f32 %v4759_v25 }
 0x299   : > { %4762 = vtanh.f32 %v1261_v20 }
 0x2a2   : > { %v4761_v26 = vpop.eup %4760 }
 0x2a3   : > { %v1422_v27 = vmul.f32 %v4761_v26, %v4759_v25  ;;  %v4763_v32 = vpop.eup %4762 }
 0x2a4   : > { %v1583_v33 = vadd.f32 1.0, %v4763_v32 }
 0x2a5   : > { %1499 = vperm.xlu0 %4683, %v1422_v27  }
 0x2a9   : > { %1675 = vrot.lane.b32.xlu0 %v5335_v28, %s4952_s8 }
 0x324   : > { %v1500_v29 = vpop.permute.xlu0 %1499 }
 0x325   : > { %v1502_v30 = vmul.f32 %v1500_v29, %v1493_v13 }
 0x327   : > { %4263 = vmatmul.mubr.msk.f32.vlgmr.msra.gmra.mrb[8].mxu1 %vm1182_vm3, %v1502_v30 }
 0x328   : > { %4266 = vmatpush3.msk.msra.mxu1 %vm1186_vm2, %v1584_v31  ;;  %4267 = vmatprep.mubr.msk.f32.mxu1 %vm4949_vm0, %v4950_v6  ;;  %v1676_v48 = vpop.permute.xlu0 %1675 }
 0x329   : > { %4275 = vmatprep.subr.mxu1 %v4950_v6  ;;  %v4513_v50 = vpack.c.bf16 %v1676_v48, %v1671_v47  ;;  %v5400_v63 = vpack.i.bf16 %v1676_v48, %v1671_v47 }
 0x32b   : > { %4268 = vmatmul.mubr.msk.f32.vlgmr.msra.gmra.mrb[10].mxu1 %vm1182_vm3, %v1583_v33 }
 0x32c   : > { %4277 = vmatprep.mubr.msk.f32.mxu1 %vm4949_vm0, %v4950_v6 }
 0x3fa   : > { %v1576_v35 = vpop.f32.mrb[8].mxu1 }
 0x3fb   : > { %v1580_v37 = vmul.f32 0.25, %v1576_v35  ;;  %v4264_v38 = vpop.f32.mrb[9].mxu1 }
 0x3fd   : > { %v1581_v40 = vadd.f32 %v1580_v37, %v1340_v36 }
 0x3fe   : > { %v1657_v41 = vpop.f32.mrb[10].mxu1 }
 0x3ff   : > { %1662 = vrot.lane.b32.xlu1 %v1657_v41, %s4953_s29  ;;  %v4269_v42 = vpop.f32.mrb[11].mxu1  ;;  %s5903_s29 = sld [smem:[#allocation18_spill]] }
 0x405   : > { %s831_s28 = scalar_lea.vmem %s5903_s29, %s5190_s6  ;;  %s4957_s6 = smov 56  }
 0x406   : > { %v1681_v32 = vld [vmem:[%s831_s28] sm:$0xff]  ;;  %s4032_s29 = sshll.u32 %s5122_s7, 7 }
 0x471   : > { %v1663_v43 = vpop.permute.xlu1 %1662 }
 0x472   : > { %v5353_v44 = vmul.f32 %v1663_v43, %v5335_v28 }
 0x474   : > { %1693 = vrot.lane.b32.xlu1 %v5353_v44, %s4952_s8 }
 0x478   : > { %4685 = vrot.lane.b32.xlu1 %v4684_v46, %s4952_s8  ;;  %s4954_s8 = smov 64  }
 0x4e6   : > { %v1694_v51 = vpop.permute.xlu1 %1693 }
 0x4e7   : > { %3729 = vst.msk [vmem:[%s5374_s30] sm:$0xff] %vm846_vm1, %v1694_v51  ;;  %4271 = vmatpush3.xpose.msk.msra.mxu0 %vm1695_vm4, %v1694_v51 }
 0x4e8   : > { %4515 = vmatprep.subr.msk.bf16.mxu0 %vm5368_vm5, %v4513_v50 }
 0x4ea   : > { %4273 = vmatmul.mubr.msk.f32.vlgmr.msra.gmra.mrb[12].mxu0 %vm1695_vm4, %v5335_v28  ;;  %v5383_v52 = vpop.permute.xlu1 %4685 }
 0x4eb   : > { %v4688_v53 = vunpack.i.h.bf16 %v5383_v52  ;;  %v4687_v54 = vunpack.i.l.bf16 %v5383_v52  ;;  %4518 = vmatpush3.bf16.xpose.msk.msra.mxu0 %vm5368_vm5, %v4513_v50  ;;  %4288 = vmatprep.mubr.msk.f32.mxu0 %vm1695_vm4, %v5262_v39 }
 0x4ed   : > { %v4519_v55 = vpack.c.bf16 %v4688_v53, %v4687_v54 }
 0x4ef   : > { %4521 = vmatprep.subr.msk.bf16.mxu0 %vm5368_vm5, %v4519_v55 }
 0x4f3   : > { %4524 = vmatpush3.bf16.xpose.msk.msra.mxu0 %vm5368_vm5, %v4519_v55 }
 0x4fa   : > { %4289 = vmatmul.mubr.msk.f32.vlgmr.msra.gmra.mrb[14].mxu0 %vm1695_vm4, %v5265_v45 }
 0x5bd   : > { %v1766_v56 = vpop.f32.mrb[12].mxu0 }
 0x5be   : > { %v4274_v57 = vpop.f32.mrb[13].mxu0  ;;  %v1770_v58 = vsel %vm1695_vm4, %v1766_v56, -inf }
 0x5bf   : > { %1771 = vmax.xlane.f32.xlu0 %v1770_v58 }
 0x5cd   : > { %v4290_v59 = vpop.f32.mrb[14].mxu0 }
 0x5ce   : > { %v1933_v60 = vpop.f32.mrb[15].mxu0  ;;  %v1945_v61 = vsel %vm846_vm1, %v4290_v59, -inf }
 0x5cf   : > { %1946 = vmax.xlane.f32.xlu0 %v1945_v61  ;;  %v1942_v62 = vsel %vm846_vm1, %v1933_v60, -inf }
 0x5d0   : > { %1943 = vmax.xlane.f32.xlu1 %v1942_v62 }
 0x5e5   : > { %1667 = vrot.lane.b32.xlu0 %v1581_v40, %s4954_s8 }
 0x5e9   : > { %4690 = vrot.lane.b32.xlu0 %v4684_v46, %s4954_s8 }
 0x5ed   : > { %4695 = vrot.lane.b32.xlu0 %v5400_v63, %s4955_s13 }
 0x5f1   : > { %2047 = vrot.lane.b32.xlu0 %v5353_v44, %s4956_s3  ;;  %s4963_s3 = smov 40  }
 0x5f5   : > { %4700 = vrot.lane.b32.xlu0 %v5383_v52, %s4955_s13 }
 0x5f9   : > { %2212 = vrot.lane.b32.xlu0 %v5265_v45, %s4955_s13 }
 0x64c   : > { %v1772_v0 = vpop.xlane.xlu0 %1771 }
 0x64d   : > { %v1773_v15 = vsub.f32 %v1766_v56, %v1772_v0 }
 0x64f   : > { %v1774_v19 = vmul.f32 1.442695, %v1773_v15 }
 0x651   : > { %4764 = vpow2.f32 %v1774_v19 }
 0x65b   : > { %v4765_v25 = vpop.eup %4764 }
 0x65c   : > { %v1947_v1 = vpop.xlane.xlu0 %1946  ;;  %v1776_v26 = vsel %vm1695_vm4, %v4765_v25, 0.0 }
 0x65d   : > { %v1949_v20 = vsub.f32 %v4290_v59, %v1947_v1  ;;  %v1944_v21 = vpop.xlane.xlu1 %1943 }
 0x65e   : > { %v1948_v23 = vsub.f32 %v1933_v60, %v1944_v21 }
 0x65f   : > { %v1952_v22 = vmul.f32 1.442695, %v1949_v20 }
 0x660   : > { %v1668_v2 = vpop.permute.xlu0 %1667  ;;  %v1950_v24 = vmul.f32 1.442695, %v1948_v23 }
 0x661   : > { %v5410_v4 = vadd.f32 %v1668_v2, %v5335_v28  ;;  %4766 = vpow2.f32 %v1952_v22 }
 0x662   : > { %4768 = vpow2.f32 %v1950_v24 }
 0x663   : > { %1683 = vrot.lane.b32.xlu1 %v5410_v4, %s4954_s8  ;;  %s4961_s8 = smov 72  }
 0x664   : > { %v5413_v5 = vpop.permute.xlu0 %4690 }
 0x665   : > { %v4693_v7 = vunpack.i.h.bf16 %v5413_v5  ;;  %v4692_v8 = vunpack.i.l.bf16 %v5413_v5 }
 0x667   : > { %v4529_v43 = vpack.c.bf16 %v4693_v7, %v4692_v8 }
 0x668   : > { %v4696_v9 = vpop.permute.xlu0 %4695 }
 0x669   : > { %v4698_v10 = vunpack.i.h.bf16 %v4696_v9  ;;  %v4697_v11 = vunpack.i.l.bf16 %v4696_v9 }
 0x66b   : > { %v4533_v12 = vpack.c.bf16 %v4698_v10, %v4697_v11  ;;  %v4767_v27 = vpop.eup %4766 }
 0x66c   : > { %v5417_v13 = vpop.permute.xlu0 %2047  ;;  %v1957_v29 = vsel %vm846_vm1, %v4767_v27, 0.0  ;;  %v4769_v30 = vpop.eup %4768 }
 0x66d   : > { %4535 = vmatprep.subr.msk.bf16.mxu0 %vm5368_vm5, %v4533_v12  ;;  %v1954_v31 = vsel %vm846_vm1, %v4769_v30, 0.0 }
 0x66e   : > { %4538 = vmatpush3.bf16.xpose.msk.msra.mxu0 %vm5368_vm5, %v4533_v12 }
 0x670   : > { %v4701_v14 = vpop.permute.xlu0 %4700 }
 0x671   : > { %v4703_v16 = vunpack.i.h.bf16 %v4701_v14  ;;  %v4702_v17 = vunpack.i.l.bf16 %v4701_v14 }
 0x673   : > { %v4539_v18 = vpack.c.bf16 %v4703_v16, %v4702_v17 }
 0x674   : > { %v2213_v47 = vpop.permute.xlu0 %2212 }
 0x675   : > { %4541 = vmatprep.subr.msk.bf16.mxu0 %vm5368_vm5, %v4539_v18 }
 0x676   : > { %4544 = vmatpush3.bf16.xpose.msk.msra.mxu0 %vm5368_vm5, %v4539_v18 }
 0x687   : > { %1777 = vadd.xlane.f32.xlu1 %v1776_v26 }
 0x68b   : > { %1958 = vadd.xlane.f32.xlu1 %v1957_v29 }
 0x68f   : > { %1955 = vadd.xlane.f32.xlu1 %v1954_v31 }
 0x6a0   : > { %2045 = vrot.lane.b32.xlu1 %v5335_v28, %s4955_s13 }
 0x6a4   : > { %2210 = vrot.lane.b32.xlu1 %v5262_v39, %s4955_s13 }
 0x6d5   : > { %v1684_v33 = vpop.permute.xlu1 %1683 }
 0x6d6   : > { %3730 = vst.msk [vmem:[%s5440_s9] sm:$0xff] %vm846_vm1, %v1684_v33  ;;  %4276 = vmatpush3.msra.mxu1 %v1684_v33  ;;  %v4525_v34 = vpack.c.bf16 %v1684_v33, %v1681_v32  ;;  %v5444_v35 = vpack.i.bf16 %v1684_v33, %v1681_v32 }
 0x6d8   : > { %4526 = vmatprep.subr.bf16.mxu1 %v4525_v34 }
 0x714   : > { %v1778_v36 = vpop.xlane.xlu1 %1777 }
 0x715   : > { %4770 = vrcp.f32 %v1778_v36 }
 0x718   : > { %v1959_v37 = vpop.xlane.xlu1 %1958 }
 0x719   : > { %4772 = vrcp.f32 %v1959_v37 }
 0x71c   : > { %v1956_v38 = vpop.xlane.xlu1 %1955 }
 0x71d   : > { %4774 = vrcp.f32 %v1956_v38 }
 0x71f   : > { %v4771_v40 = vpop.eup %4770 }
 0x720   : > { %v1780_v41 = vmul.f32 %v4771_v40, %v4765_v25  ;;  %v2046_v42 = vpop.permute.xlu1 %2045 }
 0x722   : > { %4278 = vmatmul.mubr.msk.f32.vlgmr.msra.gmra.mrb[12].mxu1 %vm1695_vm4, %v1780_v41 }
 0x723   : > { %4528 = vmatpush3.bf16.msra.mxu1 %v4525_v34  ;;  %v4773_v48 = vpop.eup %4772 }
 0x724   : > { %4530 = vmatprep.subr.bf16.mxu1 %v4529_v43  ;;  %v2211_v46 = vpop.permute.xlu1 %2210  ;;  %v1963_v53 = vmul.f32 %v4773_v48, %v4767_v27 }
 0x725   : > { %4320 = vmatprep.mubr.msk.f32.mxu0 %vm1695_vm4, %v2211_v46 }
 0x726   : > { %4321 = vmatmul.mubr.msk.f32.vlgmr.msra.gmra.mrb[16].mxu0 %vm1695_vm4, %v2213_v47 }
 0x727   : > { %v4775_v50 = vpop.eup %4774  ;;  %4532 = vmatpush3.bf16.msra.mxu1 %v4529_v43 }
 0x728   : > { %v1962_v51 = vmul.f32 %v4775_v50, %v4769_v30  ;;  %4302 = vmatprep.subr.mxu1 %v4950_v6 }
 0x72a   : > { %4299 = vmatprep.mubr.msk.f32.mxu1 %vm846_vm1, %v1962_v51 }
 0x72b   : > { %4300 = vmatmul.mubr.msk.f32.vlgmr.msra.gmra.mrb[14].mxu1 %vm846_vm1, %v1963_v53 }
 0x72c   : > { %4304 = vmatprep.mubr.msk.f32.mxu1 %vm4949_vm0, %v4950_v6 }
 0x730   : > { %4303 = vmatpush3.xpose.msk.msra.mxu1 %vm1695_vm4, %v5417_v13 }
 0x731   : > { %4307 = vmatprep.subr.mxu1 %v4950_v6 }
 0x733   : > { %4305 = vmatmul.mubr.msk.f32.vlgmr.msra.gmra.mrb[16].mxu1 %vm1695_vm4, %v2046_v42 }
 0x734   : > { %4309 = vmatprep.mubr.msk.f32.mxu1 %vm4949_vm0, %v4950_v6 }
 0x7f5   : > { %v5460_v54 = vpop.f32.mrb[12].mxu1 }
 0x7f6   : > { %v4279_v55 = vpop.f32.mrb[13].mxu1 }
 0x7f9   : > { %v4322_v56 = vpop.f32.mrb[16].mxu0 }
 0x7fa   : > { %v2300_v57 = vpop.f32.mrb[17].mxu0  ;;  %v2312_v61 = vsel %vm846_vm1, %v4322_v56, -inf }
 0x7fb   : > { %v2309_v58 = vsel %vm846_vm1, %v2300_v57, -inf }
 0x7fc   : > { %2310 = vmax.xlane.f32.xlu0 %v2309_v58 }
 0x7fe   : > { %v5463_v59 = vpop.f32.mrb[14].mxu1 }
 0x7ff   : > { %v5465_v60 = vpop.f32.mrb[15].mxu1 }
 0x800   : > { %2313 = vmax.xlane.f32.xlu0 %v2312_v61 }
 0x806   : > { %v2119_v62 = vpop.f32.mrb[16].mxu1 }
 0x807   : > { %v4306_v0 = vpop.f32.mrb[17].mxu1  ;;  %v2123_v1 = vsel %vm1695_vm4, %v2119_v62, -inf }
 0x808   : > { %2124 = vmax.xlane.f32.xlu1 %v2123_v1 }
 0x889   : > { %v2311_v2 = vpop.xlane.xlu0 %2310 }
 0x88a   : > { %v2315_v7 = vsub.f32 %v2300_v57, %v2311_v2 }
 0x88c   : > { %v2317_v8 = vmul.f32 1.442695, %v2315_v7 }
 0x88d   : > { %v2314_v9 = vpop.xlane.xlu0 %2313 }
 0x88e   : > { %4776 = vpow2.f32 %v2317_v8  ;;  %v2316_v10 = vsub.f32 %v4322_v56, %v2314_v9 }
 0x890   : > { %v2319_v11 = vmul.f32 1.442695, %v2316_v10 }
 0x892   : > { %4778 = vpow2.f32 %v2319_v11 }
 0x895   : > { %v2125_v16 = vpop.xlane.xlu1 %2124 }
 0x896   : > { %v2126_v17 = vsub.f32 %v2119_v62, %v2125_v16 }
 0x898   : > { %v4777_v12 = vpop.eup %4776  ;;  %v2127_v18 = vmul.f32 1.442695, %v2126_v17 }
 0x899   : > { %v2321_v13 = vsel %vm846_vm1, %v4777_v12, 0.0 }
 0x89a   : > { %2322 = vadd.xlane.f32.xlu0 %v2321_v13  ;;  %4780 = vpow2.f32 %v2127_v18 }
 0x89c   : > { %v5470_v14 = vpop.eup %4778 }
 0x89d   : > { %v2324_v15 = vsel %vm846_vm1, %v5470_v14, 0.0 }
 0x89e   : > { %2325 = vadd.xlane.f32.xlu1 %v2324_v15 }
 0x8a4   : > { %v4781_v19 = vpop.eup %4780 }
 0x8a5   : > { %v2129_v20 = vsel %vm1695_vm4, %v4781_v19, 0.0 }
 0x8af   : > { %2134 = vrot.lane.b32.xlu1 %v5410_v4, %s4957_s6  ;;  %s5904_s6 = sld [smem:[#allocation21_spill]] }
 0x8b0   : > { %4705 = vrot.lane.b32.xlu0 %v5444_v35, %s4955_s13 }
 0x8b4   : > { %4715 = vrot.lane.b32.xlu0 %v5400_v63, %s4958_s5 }
 0x8b8   : > { %2425 = vrot.lane.b32.xlu0 %v5335_v28, %s4958_s5 }
 0x8bc   : > { %2590 = vrot.lane.b32.xlu0 %v5262_v39, %s4958_s5 }
 0x8d3   : > { %2130 = vadd.xlane.f32.xlu1 %v2129_v20 }
 0x8e4   : > { %4710 = vrot.lane.b32.xlu1 %v5413_v5, %s4955_s13  ;;  %s4962_s13 = smov 48  }
 0x8e8   : > { %2427 = vrot.lane.b32.xlu1 %v5353_v44, %s4959_s0  ;;  %s5714_s0 = scalar_lea.hbm %s5849_s24, %s4032_s29 }
 0x8ec   : > { %4720 = vrot.lane.b32.xlu1 %v5383_v52, %s4958_s5 }
 0x8f0   : > { %2592 = vrot.lane.b32.xlu1 %v5265_v45, %s4958_s5 }
 0x927   : > { %v2323_v21 = vpop.xlane.xlu0 %2322 }
 0x928   : > { %4782 = vrcp.f32 %v2323_v21 }
 0x92b   : > { %v4706_v22 = vpop.permute.xlu0 %4705  ;;  %v2326_v23 = vpop.xlane.xlu1 %2325 }
 0x92c   : > { %v4708_v24 = vunpack.i.h.bf16 %v4706_v22  ;;  %v4707_v25 = vunpack.i.l.bf16 %v4706_v22 }
 0x92e   : > { %v4545_v26 = vpack.c.bf16 %v4708_v24, %v4707_v25 }
 0x92f   : > { %v4716_v27 = vpop.permute.xlu0 %4715  ;;  %v2135_v29 = vpop.permute.xlu1 %2134 }
 0x930   : > { %v4718_v30 = vunpack.i.h.bf16 %v4716_v27  ;;  %v4717_v31 = vunpack.i.l.bf16 %v4716_v27  ;;  %4308 = vmatpush3.msra.mxu1 %v2135_v29 }
 0x931   : > { %4546 = vmatprep.subr.bf16.mxu1 %v4545_v26 }
 0x932   : > { %v4553_v32 = vpack.c.bf16 %v4718_v30, %v4717_v31  ;;  %v4783_v40 = vpop.eup %4782 }
 0x933   : > { %v2426_v33 = vpop.permute.xlu0 %2425  ;;  %v2329_v51 = vmul.f32 %v4783_v40, %v4777_v12 }
 0x934   : > { %4555 = vmatprep.subr.msk.bf16.mxu0 %vm5368_vm5, %v4553_v32 }
 0x935   : > { %4558 = vmatpush3.bf16.xpose.msk.msra.mxu0 %vm5368_vm5, %v4553_v32 }
 0x937   : > { %v2591_v34 = vpop.permute.xlu0 %2590 }
 0x938   : > { %4352 = vmatprep.mubr.msk.f32.mxu0 %vm1695_vm4, %v2591_v34 }
 0x960   : > { %v2131_v36 = vpop.xlane.xlu1 %2130 }
 0x961   : > { %4784 = vrcp.f32 %v2131_v36 }
 0x962   : > { %4786 = vrcp.f32 %v2326_v23 }
 0x964   : > { %v4711_v37 = vpop.permute.xlu1 %4710 }
 0x965   : > { %v4713_v41 = vunpack.i.h.bf16 %v4711_v37  ;;  %v4712_v42 = vunpack.i.l.bf16 %v4711_v37 }
 0x967   : > { %v4549_v53 = vpack.c.bf16 %v4713_v41, %v4712_v42 }
 0x968   : > { %v2428_v38 = vpop.permute.xlu1 %2427 }
 0x96b   : > { %v4785_v43 = vpop.eup %4784 }
 0x96c   : > { %v2133_v46 = vmul.f32 %v4785_v43, %v4781_v19  ;;  %v4721_v47 = vpop.permute.xlu1 %4720  ;;  %v4787_v56 = vpop.eup %4786 }
 0x96d   : > { %v4723_v48 = vunpack.i.h.bf16 %v4721_v47  ;;  %v4722_v50 = vunpack.i.l.bf16 %v4721_v47  ;;  %v2330_v57 = vmul.f32 %v4787_v56, %v5470_v14 }
 0x96e   : > { %4310 = vmatmul.mubr.msk.f32.vlgmr.msra.gmra.mrb[18].mxu1 %vm1695_vm4, %v2133_v46 }
 0x96f   : > { %v4559_v55 = vpack.c.bf16 %v4723_v48, %v4722_v50  ;;  %4548 = vmatpush3.bf16.msra.mxu1 %v4545_v26  ;;  %4331 = vmatprep.mubr.msk.f32.mxu1 %vm846_vm1, %v2329_v51 }
 0x970   : > { %4550 = vmatprep.subr.bf16.mxu1 %v4549_v53  ;;  %v2593_v58 = vpop.permute.xlu1 %2592 }
 0x971   : > { %4561 = vmatprep.subr.msk.bf16.mxu0 %vm5368_vm5, %v4559_v55 }
 0x972   : > { %4564 = vmatpush3.bf16.xpose.msk.msra.mxu0 %vm5368_vm5, %v4559_v55 }
 0x973   : > { %4552 = vmatpush3.bf16.msra.mxu1 %v4549_v53 }
 0x974   : > { %4334 = vmatprep.subr.mxu1 %v4950_v6 }
 0x976   : > { %4332 = vmatmul.mubr.msk.f32.vlgmr.msra.gmra.mrb[20].mxu1 %vm846_vm1, %v2330_v57 }
 0x977   : > { %4336 = vmatprep.mubr.msk.f32.mxu1 %vm4949_vm0, %v4950_v6 }
 0x979   : > { %4353 = vmatmul.mubr.msk.f32.vlgmr.msra.gmra.mrb[18].mxu0 %vm1695_vm4, %v2593_v58 }
 0x97c   : > { %4335 = vmatpush3.xpose.msk.msra.mxu1 %vm1695_vm4, %v2428_v38 }
 0x97d   : > { %4339 = vmatprep.subr.mxu1 %v4950_v6 }
 0x97f   : > { %4337 = vmatmul.mubr.msk.f32.vlgmr.msra.gmra.mrb[22].mxu1 %vm1695_vm4, %v2426_v33 }
 0x980   : > { %4341 = vmatprep.mubr.msk.f32.mxu1 %vm4949_vm0, %v4950_v6 }
 0xa41   : > { %v5513_v61 = vpop.f32.mrb[18].mxu1 }
 0xa42   : > { %v4311_v62 = vpop.f32.mrb[19].mxu1 }
 0xa49   : > { %v5515_v0 = vpop.f32.mrb[20].mxu1 }
 0xa4a   : > { %v5517_v1 = vpop.f32.mrb[21].mxu1 }
 0xa4c   : > { %v4354_v2 = vpop.f32.mrb[18].mxu0 }
 0xa4d   : > { %v2680_v7 = vpop.f32.mrb[19].mxu0  ;;  %v2692_v12 = vsel %vm846_vm1, %v4354_v2, -inf }
 0xa4e   : > { %v2689_v8 = vsel %vm846_vm1, %v2680_v7, -inf }
 0xa4f   : > { %2690 = vmax.xlane.f32.xlu1 %v2689_v8 }
 0xa52   : > { %v2499_v9 = vpop.f32.mrb[22].mxu1 }
 0xa53   : > { %v4338_v10 = vpop.f32.mrb[23].mxu1  ;;  %v2503_v11 = vsel %vm1695_vm4, %v2499_v9, -inf }
 0xa54   : > { %2504 = vmax.xlane.f32.xlu0 %v2503_v11 }
 0xa58   : > { %2693 = vmax.xlane.f32.xlu0 %v2692_v12 }
 0xadc   : > { %v2691_v13 = vpop.xlane.xlu1 %2690 }
 0xadd   : > { %v2695_v14 = vsub.f32 %v2680_v7, %v2691_v13 }
 0xadf   : > { %v2697_v15 = vmul.f32 1.442695, %v2695_v14 }
 0xae1   : > { %4788 = vpow2.f32 %v2697_v15  ;;  %v2505_v16 = vpop.xlane.xlu0 %2504 }
 0xae2   : > { %v2506_v17 = vsub.f32 %v2499_v9, %v2505_v16 }
 0xae4   : > { %v2507_v20 = vmul.f32 1.442695, %v2506_v17 }
 0xae5   : > { %v2694_v18 = vpop.xlane.xlu0 %2693 }
 0xae6   : > { %v2696_v19 = vsub.f32 %v4354_v2, %v2694_v18 }
 0xae8   : > { %v2699_v21 = vmul.f32 1.442695, %v2696_v19 }
 0xaea   : > { %4790 = vpow2.f32 %v2699_v21 }
 0xaeb   : > { %v4789_v22 = vpop.eup %4788  ;;  %4792 = vpow2.f32 %v2507_v20 }
 0xaec   : > { %v2701_v23 = vsel %vm846_vm1, %v4789_v22, 0.0 }
 0xaed   : > { %2702 = vadd.xlane.f32.xlu1 %v2701_v23 }
 0xaf4   : > { %v4791_v24 = vpop.eup %4790 }
 0xaf5   : > { %v2704_v25 = vsel %vm846_vm1, %v4791_v24, 0.0  ;;  %v4793_v26 = vpop.eup %4792 }
 0xaf6   : > { %2705 = vadd.xlane.f32.xlu0 %v2704_v25  ;;  %v2509_v27 = vsel %vm1695_vm4, %v4793_v26, 0.0 }
 0xafa   : > { %2510 = vadd.xlane.f32.xlu0 %v2509_v27 }
 0xafe   : > { %4725 = vrot.lane.b32.xlu1 %v5444_v35, %s4958_s5 }
 0xb02   : > { %4730 = vrot.lane.b32.xlu1 %v5413_v5, %s4958_s5  ;;  %s5905_s5 = smov %s5904_s6 }
 0xb06   : > { %4735 = vrot.lane.b32.xlu1 %v5400_v63, %s4960_s1 }
 0xb0a   : > { %2806 = vrot.lane.b32.xlu1 %v5353_v44, %s4961_s8  ;;  %s5909_s8 = sld [smem:[#allocation24_spill]] }
 0xb0e   : > { %2969 = vrot.lane.b32.xlu1 %v5262_v39, %s4960_s1 }
 0xb10   : > { %2514 = vrot.lane.b32.xlu0 %v5410_v4, %s4962_s13  ;;  %s3736_s13 = sand.u32 1, %s5122_s7  }
 0xb14   : > { %4740 = vrot.lane.b32.xlu0 %v5383_v52, %s4960_s1 }
 0xb18   : > { %2804 = vrot.lane.b32.xlu0 %v5335_v28, %s4960_s1 }
 0xb1c   : > { %2971 = vrot.lane.b32.xlu0 %v5265_v45, %s4960_s1 }
 0xb7a   : > { %v2703_v29 = vpop.xlane.xlu1 %2702 }
 0xb7b   : > { %4794 = vrcp.f32 %v2703_v29 }
 0xb7e   : > { %v4726_v63 = vpop.permute.xlu1 %4725 }
 0xb7f   : > { %v4728_v32 = vunpack.i.h.bf16 %v4726_v63  ;;  %v4727_v39 = vunpack.i.l.bf16 %v4726_v63 }
 0xb81   : > { %v4565_v38 = vpack.c.bf16 %v4728_v32, %v4727_v39 }
 0xb82   : > { %v4731_v30 = vpop.permute.xlu1 %4730 }
 0xb83   : > { %v2706_v31 = vpop.xlane.xlu0 %2705  ;;  %v4733_v46 = vunpack.i.h.bf16 %v4731_v30  ;;  %v4732_v47 = vunpack.i.l.bf16 %v4731_v30 }
 0xb85   : > { %v4795_v41 = vpop.eup %4794  ;;  %v4569_v55 = vpack.c.bf16 %v4733_v46, %v4732_v47 }
 0xb86   : > { %v4736_v44 = vpop.permute.xlu1 %4735  ;;  %v2709_v53 = vmul.f32 %v4795_v41, %v4789_v22  ;;  %v3230_v41 = vld [vmem:[%s5904_s6] sm:$0xff] }
 0xb87   : > { %v4738_v33 = vunpack.i.h.bf16 %v4736_v44  ;;  %v4737_v34 = vunpack.i.l.bf16 %v4736_v44  ;;  %v2511_v36 = vpop.xlane.xlu0 %2510 }
 0xb88   : > { %4796 = vrcp.f32 %v2511_v36 }
 0xb89   : > { %v4573_v37 = vpack.c.bf16 %v4738_v33, %v4737_v34  ;;  %4798 = vrcp.f32 %v2706_v31 }
 0xb8a   : > { %v2807_v52 = vpop.permute.xlu1 %2806 }
 0xb8b   : > { %v2515_v40 = vpop.permute.xlu0 %2514  ;;  %4575 = vmatprep.subr.msk.bf16.mxu0 %vm5368_vm5, %v4573_v37 }
 0xb8c   : > { %4340 = vmatpush3.msra.mxu1 %v2515_v40  ;;  %4578 = vmatpush3.bf16.xpose.msk.msra.mxu0 %vm5368_vm5, %v4573_v37 }
 0xb8d   : > { %4566 = vmatprep.subr.bf16.mxu1 %v4565_v38 }
 0xb8e   : > { %v2970_v45 = vpop.permute.xlu1 %2969 }
 0xb8f   : > { %v4741_v28 = vpop.permute.xlu0 %4740  ;;  %4384 = vmatprep.mubr.msk.f32.mxu0 %vm1695_vm4, %v2970_v45 }
 0xb90   : > { %v4743_v42 = vunpack.i.h.bf16 %v4741_v28  ;;  %v4742_v43 = vunpack.i.l.bf16 %v4741_v28 }
 0xb92   : > { %v4797_v48 = vpop.eup %4796  ;;  %v4579_v50 = vpack.c.bf16 %v4743_v42, %v4742_v43  ;;  %v3231_v42 = vld [vmem:[%s5905_s5 + $0x8] sm:$0xff] }
 0xb93   : > { %v2513_v51 = vmul.f32 %v4797_v48, %v4793_v26  ;;  %v2805_v56 = vpop.permute.xlu0 %2804  ;;  %v4799_v57 = vpop.eup %4798  ;;  %v4594_v46 = vpack.c.bf16 %v3231_v42, %v3230_v41  ;;  %v3232_v48 = vld [vmem:[%s5905_s5 + $0x10] sm:$0xff] }
 0xb94   : > { %4581 = vmatprep.subr.msk.bf16.mxu0 %vm5368_vm5, %v4579_v50  ;;  %v2710_v58 = vmul.f32 %v4799_v57, %v4791_v24 }
 0xb95   : > { %4342 = vmatmul.mubr.msk.f32.vlgmr.msra.gmra.mrb[24].mxu1 %vm1695_vm4, %v2513_v51  ;;  %4584 = vmatpush3.bf16.xpose.msk.msra.mxu0 %vm5368_vm5, %v4579_v50  ;;  %v3233_v50 = vld [vmem:[%s5905_s5 + $0x18] sm:$0xff] }
 0xb96   : > { %4568 = vmatpush3.bf16.msra.mxu1 %v4565_v38  ;;  %4363 = vmatprep.mubr.msk.f32.mxu1 %vm846_vm1, %v2709_v53 }
 0xb97   : > { %4570 = vmatprep.subr.bf16.mxu1 %v4569_v55  ;;  %4599 = vmatprep.subr.bf16.mxu0 %v4948_v3  ;;  %v2972_v62 = vpop.permute.xlu0 %2971 }
 0xb9a   : > { %4572 = vmatpush3.bf16.msra.mxu1 %v4569_v55 }
 0xb9b   : > { %4366 = vmatprep.subr.mxu1 %v4950_v6 }
 0xb9c   : > { %4385 = vmatmul.mubr.msk.f32.vlgmr.msra.gmra.mrb[20].mxu0 %vm1695_vm4, %v2972_v62 }
 0xb9d   : > { %4364 = vmatmul.mubr.msk.f32.vlgmr.msra.gmra.mrb[26].mxu1 %vm846_vm1, %v2710_v58  ;;  %4423 = vmatprep.mubr.msk.f32.mxu0 %vm4949_vm0, %v4950_v6 }
 0xb9e   : > { %4368 = vmatprep.mubr.msk.f32.mxu1 %vm4949_vm0, %v4950_v6 }
 0xba3   : > { %4367 = vmatpush3.xpose.msk.msra.mxu1 %vm1695_vm4, %v2807_v52 }
 0xba4   : > { %4371 = vmatprep.subr.mxu1 %v4950_v6 }
 0xba6   : > { %4369 = vmatmul.mubr.msk.f32.vlgmr.msra.gmra.mrb[28].mxu1 %vm1695_vm4, %v2805_v56  ;;  %v4597_v56 = vpack.c.bf16 %v3233_v50, %v3232_v48 }
 0xba7   : > { %4373 = vmatprep.mubr.msk.f32.mxu1 %vm4949_vm0, %v4950_v6 }
 0xc68   : > { %v2586_v49 = vpop.f32.mrb[24].mxu1 }
 0xc69   : > { %v4343_v2 = vpop.f32.mrb[25].mxu1 }
 0xc6f   : > { %v4386_v7 = vpop.f32.mrb[20].mxu0 }
 0xc70   : > { %v5565_v8 = vpop.f32.mrb[26].mxu1  ;;  %v3059_v9 = vpop.f32.mrb[21].mxu0  ;;  %v3071_v12 = vsel %vm846_vm1, %v4386_v7, -inf }
 0xc71   : > { %v2795_v10 = vpop.f32.mrb[27].mxu1  ;;  %v3068_v11 = vsel %vm846_vm1, %v3059_v9, -inf }
 0xc72   : > { %3069 = vmax.xlane.f32.xlu0 %v3068_v11  ;;  %v3448_v11 = vld [vmem:[%s5909_s8] sm:$0xff] }
 0xc76   : > { %3072 = vmax.xlane.f32.xlu0 %v3071_v12  ;;  %v3449_v12 = vld [vmem:[%s5909_s8 + $0x8] sm:$0xff] }
 0xc79   : > { %v2878_v13 = vpop.f32.mrb[28].mxu1 }
 0xc7a   : > { %v4370_v14 = vpop.f32.mrb[29].mxu1  ;;  %v2882_v15 = vsel %vm1695_vm4, %v2878_v13, -inf }
 0xc7b   : > { %2883 = vmax.xlane.f32.xlu1 %v2882_v15 }
 0xcff   : > { %v3070_v16 = vpop.xlane.xlu0 %3069 }
 0xd00   : > { %v3074_v17 = vsub.f32 %v3059_v9, %v3070_v16  ;;  %v3450_v16 = vld [vmem:[%s5909_s8 + $0x10] sm:$0xff] }
 0xd02   : > { %v3076_v18 = vmul.f32 1.442695, %v3074_v17  ;;  %v3451_v17 = vld [vmem:[%s5909_s8 + $0x18] sm:$0xff] }
 0xd03   : > { %v3073_v19 = vpop.xlane.xlu0 %3072 }
 0xd04   : > { %4800 = vpow2.f32 %v3076_v18  ;;  %v3075_v20 = vsub.f32 %v4386_v7, %v3073_v19 }
 0xd06   : > { %v3078_v21 = vmul.f32 1.442695, %v3075_v20 }
 0xd08   : > { %4802 = vpow2.f32 %v3078_v21  ;;  %v2884_v26 = vpop.xlane.xlu1 %2883 }
 0xd09   : > { %v2885_v27 = vsub.f32 %v2878_v13, %v2884_v26 }
 0xd0b   : > { %v2886_v29 = vmul.f32 1.442695, %v2885_v27 }
 0xd0d   : > { %4804 = vpow2.f32 %v2886_v29 }
 0xd0e   : > { %v4801_v22 = vpop.eup %4800 }
 0xd0f   : > { %v3080_v23 = vsel %vm846_vm1, %v4801_v22, 0.0 }
 0xd10   : > { %3081 = vadd.xlane.f32.xlu0 %v3080_v23 }
 0xd12   : > { %v4803_v24 = vpop.eup %4802 }
 0xd13   : > { %v3083_v25 = vsel %vm846_vm1, %v4803_v24, 0.0 }
 0xd14   : > { %3084 = vadd.xlane.f32.xlu1 %v3083_v25 }
 0xd17   : > { %v4805_v63 = vpop.eup %4804 }
 0xd18   : > { %v2888_v30 = vsel %vm1695_vm4, %v4805_v63, 0.0 }
 0xd25   : > { %2893 = vrot.lane.b32.xlu1 %v5410_v4, %s4963_s3  ;;  %s5906_s3 = sld [smem:[#allocation23_spill]] }
 0xd26   : > { %4745 = vrot.lane.b32.xlu0 %v5444_v35, %s4960_s1 }
 0xd2a   : > { %3184 = vrot.lane.b32.xlu0 %v5513_v61, %s5866_s27 }
 0xd2b   : > { %v3330_v43 = vld [vmem:[%s5906_s3] sm:$0xff]  ;;  %v3331_v47 = vld [vmem:[%s5906_s3 + $0x8] sm:$0xff]  ;;  %v3332_v53 = vld [vmem:[%s5906_s3 + $0x10] sm:$0xff] }
 0xd2c   : > { %v4600_v51 = vpack.c.bf16 %v3331_v47, %v3330_v43  ;;  %v3333_v55 = vld [vmem:[%s5906_s3 + $0x18] sm:$0xff] }
 0xd2d   : > { %v4603_v57 = vpack.c.bf16 %v3333_v55, %v3332_v53 }
 0xd2e   : > { %3210 = vrot.lane.b32.xlu0 %v2795_v10, %s5865_s23  ;;  %4601 = vmatpush3.bf16.msra.mxu0 %v4600_v51 }
 0xd2f   : > { %4602 = vmatprep.subr.bf16.mxu0 %v4948_v3 }
 0xd32   : > { %4604 = vmatpush3.bf16.msra.mxu0 %v4603_v57 }
 0xd33   : > { %4449 = vmatprep.subr.mxu0 %v4950_v6 }
 0xd49   : > { %2889 = vadd.xlane.f32.xlu1 %v2888_v30 }
 0xd5a   : > { %4750 = vrot.lane.b32.xlu1 %v5413_v5, %s4960_s1  ;;  %s3771_s1 = sshll.u32 %s5374_s30, 4  ;;  %s3772_s1 = int_to_ptr.vmem [resolvable:$true] %s3771_s1 }
 0xd5e   : > { %3188 = vrot.lane.b32.xlu1 %v2586_v49, %s5865_s23 }
 0xd62   : > { %3202 = vrot.lane.b32.xlu1 %v5517_v1, %s5866_s27  ;;  %s4967_s27 = smov [#allocation4]  }
 0xd63   : > { %s4828_s23 = sshll.u32 %s4967_s27, 4  ;;  %s4829_s23 = int_to_ptr.vmem [resolvable:$false] %s4828_s23 }
 0xd64   : > { %s4830_s3 = scalar_lea.vmem %s4829_s23, 256  ;;  %p4831_p0 = scmp.lt.s32.totalorder %s3772_s1, %s4829_s23 }
 0xd9d   : > { %v3082_v4 = vpop.xlane.xlu0 %3081 }
 0xd9e   : > { %4806 = vrcp.f32 %v3082_v4 }
 0xda1   : > { %v4746_v35 = vpop.permute.xlu0 %4745  ;;  %v3085_v61 = vpop.xlane.xlu1 %3084 }
 0xda2   : > { %v4748_v31 = vunpack.i.h.bf16 %v4746_v35  ;;  %v4747_v44 = vunpack.i.l.bf16 %v4746_v35 }
 0xda4   : > { %v4585_v32 = vpack.c.bf16 %v4748_v31, %v4747_v44 }
 0xda5   : > { %v2894_v39 = vpop.permute.xlu1 %2893  ;;  %v3185_v7 = vpop.permute.xlu0 %3184 }
 0xda6   : > { %4372 = vmatpush3.msra.mxu1 %v2894_v39 }
 0xda7   : > { %4586 = vmatprep.subr.bf16.mxu1 %v4585_v32 }
 0xda8   : > { %v4807_v5 = vpop.eup %4806 }
 0xda9   : > { %v3088_v1 = vmul.f32 %v4807_v5, %v4801_v22  ;;  %v3211_v9 = vpop.permute.xlu0 %3210 }
 0xdd6   : > { %v2890_v33 = vpop.xlane.xlu1 %2889 }
 0xdd7   : > { %4808 = vrcp.f32 %v2890_v33 }
 0xdd8   : > { %4810 = vrcp.f32 %v3085_v61 }
 0xdda   : > { %v4751_v34 = vpop.permute.xlu1 %4750 }
 0xddb   : > { %v4753_v36 = vunpack.i.h.bf16 %v4751_v34  ;;  %v4752_v37 = vunpack.i.l.bf16 %v4751_v34 }
 0xddd   : > { %v4589_v40 = vpack.c.bf16 %v4753_v36, %v4752_v37 }
 0xdde   : > { %v3189_v10 = vpop.permute.xlu1 %3188 }
 0xde1   : > { %v4809_v52 = vpop.eup %4808 }
 0xde2   : > { %v2892_v38 = vmul.f32 %v4809_v52, %v4805_v63  ;;  %v4811_v45 = vpop.eup %4810  ;;  %v3203_v18 = vpop.permute.xlu1 %3202 }
 0xde3   : > { %v3089_v28 = vmul.f32 %v4811_v45, %v4803_v24  ;;  %v3224_v19 = vsel %vm1695_vm4, %v5465_v60, %v3203_v18 }
 0xde4   : > { %4374 = vmatmul.mubr.msk.f32.vlgmr.msra.gmra.mrb[30].mxu1 %vm1695_vm4, %v2892_v38  ;;  %v3226_v21 = vsel %vm3196_vm6, %v3224_v19, %v3211_v9 }
 0xde5   : > { %4588 = vmatpush3.bf16.msra.mxu1 %v4585_v32  ;;  %4395 = vmatprep.mubr.msk.f32.mxu1 %vm846_vm1, %v3088_v1 }
 0xde6   : > { %4590 = vmatprep.subr.bf16.mxu1 %v4589_v40 }
 0xde9   : > { %4592 = vmatpush3.bf16.msra.mxu1 %v4589_v40 }
 0xdea   : > { %4593 = vmatprep.subr.bf16.mxu1 %v4948_v3 }
 0xdec   : > { %4396 = vmatmul.mubr.msk.f32.vlgmr.msra.gmra.mrb[32].mxu1 %vm846_vm1, %v3089_v28 }
 0xded   : > { %4406 = vmatprep.mubr.msk.f32.mxu1 %vm4949_vm0, %v4950_v6  ;;  %4595 = vmatpush3.bf16.msra.mxu1 %v4594_v46 }
 0xdee   : > { %4596 = vmatprep.subr.bf16.mxu1 %v4948_v3 }
 0xdf1   : > { %4598 = vmatpush3.bf16.msra.mxu1 %v4597_v56 }
 0xdf2   : > { %4605 = vmatprep.subr.bf16.mxu1 %v4948_v3 }
 0xeb7   : > { %v2965_v58 = vpop.f32.mrb[30].mxu1 }
 0xeb8   : > { %3192 = vrot.lane.b32.xlu0 %v2965_v58, %s4966_s12  ;;  %v4375_v62 = vpop.f32.mrb[31].mxu1 }
 0xeb9   : > { %v3532_v62 = vld [vmem:[%s5836_s11] sm:$0x3] }
 0xebc   : > { %3204 = vrot.lane.b32.xlu0 %v5515_v0, %s5907_s14  ;;  %v3195_v0 = vsel %vm1695_vm4, %v5460_v54, %v3185_v7  ;;  %v4609_v54 = vpack.c.bf16 %v3451_v17, %v3450_v16 }
 0xebd   : > { %v3197_v13 = vsel %vm3196_vm6, %v3195_v0, %v3189_v10 }
 0xebf   : > { %v4397_v49 = vpop.f32.mrb[32].mxu1 }
 0xec0   : > { %v3174_v2 = vpop.f32.mrb[33].mxu1  ;;  %3220 = vrot.lane.b32.xlu0 %v4397_v49, %s4966_s12  ;;  %v3629_v49 = vld [vmem:[%s5835_s10] sm:$0xff] }
 0xec1   : > { %3218 = vrot.lane.b32.xlu1 %v3174_v2, %s4966_s12  ;;  %s5717_s12 = scalar_lea.sflag [#allocation5], %s3736_s13 }
 0xec5   : > { %3212 = vrot.lane.b32.xlu1 %v5565_v8, %s5908_s15  ;;  %v4606_v8 = vpack.c.bf16 %v3449_v12, %v3448_v11  ;;  %s4824_s15 = scalar_lea.vmem %s3772_s1, 128 }
 0xec6   : > { %p4825_p11 = scmp.ne.s32.totalorder %s3772_s1, %s4824_s15  ;;  %p4832_p1 = scmp.lt.s32.totalorder %s4830_s3, %s4824_s15 }
 0xec8   : > { %p4826_p12 = pnand %p4825_p11, %p5141_p5  ;;  %p4833_p2 = por %p4832_p1, %p4831_p0 }
 0xeca   : > { %p4827_p13 = pneg %p4826_p12 }
 0xecc   : > { %p4834_p3 = pnand %p4833_p2, %p4827_p13 }
 0xf2a   : > { %v3193_v14 = vpop.permute.xlu0 %3192 }
 0xf2b   : > { %v3199_v15 = vsel %vm3198_vm7, %v3197_v13, %v3193_v14 }
 0xf2c   : > { %4407 = vmatmul.mubr.msk.f32.vlgmr.msra.gmra.mrb[34].mxu1 %vm846_vm1, %v3199_v15  ;;  %4424 = vmatmul.mubr.msk.f32.vlgmr.msra.gmra.mrb[22].mxu0 %vm846_vm1, %v3199_v15 }
 0xf2d   : > { %4409 = vmatprep.mubr.msk.f32.mxu1 %vm4949_vm0, %v4950_v6  ;;  %4426 = vmatprep.mubr.msk.f32.mxu0 %vm4949_vm0, %v4950_v6 }
 0xf2e   : > { %4607 = vmatpush3.bf16.msra.mxu1 %v4606_v8  ;;  %v3205_v20 = vpop.permute.xlu0 %3204  ;;  %4450 = vmatpush3.msk.msra.mxu0 %vm3542_vm9, %v3532_v62 }
 0xf2f   : > { %4608 = vmatprep.subr.bf16.mxu1 %v4948_v3  ;;  %v3225_v3 = vsel %vm1695_vm4, %v5463_v59, %v3205_v20 }
 0xf32   : > { %4610 = vmatpush3.bf16.msra.mxu1 %v4609_v54  ;;  %v3221_v24 = vpop.permute.xlu0 %3220 }
 0xf33   : > { %v3219_v22 = vpop.permute.xlu1 %3218  ;;  %4460 = vmatprep.subr.mxu1 %v4950_v6 }
 0xf34   : > { %v3228_v23 = vsel %vm3198_vm7, %v3226_v21, %v3219_v22 }
 0xf35   : > { %4410 = vmatmul.mubr.msk.f32.gmra.mrb[36].mxu1 %vm846_vm1, %v3228_v23  ;;  %4427 = vmatmul.mubr.msk.f32.gmra.mrb[24].mxu0 %vm846_vm1, %v3228_v23 }
 0xf36   : > { %4412 = vmatprep.mubr.msk.f32.mxu1 %vm4949_vm0, %v4950_v6  ;;  %4429 = vmatprep.mubr.msk.f32.mxu0 %vm4949_vm0, %v4950_v6 }
 0xf37   : > { %v3213_v60 = vpop.permute.xlu1 %3212 }
 0xf38   : > { %v3227_v25 = vsel %vm3196_vm6, %v3225_v3, %v3213_v60 }
 0xf39   : > { %v3229_v26 = vsel %vm3198_vm7, %v3227_v25, %v3221_v24 }
 0xf3a   : > { %4413 = vmatmul.mubr.msk.f32.gmra.mrb[38].mxu1 %vm846_vm1, %v3229_v26  ;;  %4430 = vmatmul.mubr.msk.f32.gmra.mrb[26].mxu0 %vm846_vm1, %v3229_v26 }
 0xf3b   : > { %4440 = vmatprep.mubr.msk.f32.mxu1 %vm4949_vm0, %v4950_v6  ;;  %4451 = vmatprep.mubr.msk.f32.mxu0 %vm4949_vm0, %v4950_v6 }
 0xf3e   : > { %4441 = vmatmul.mubr.msk.f32.vlgmr.msra.gmra.mrb[40].mxu1 %vm846_vm1, %v3199_v15 }
 0xf3f   : > { %4443 = vmatprep.mubr.msk.f32.mxu1 %vm4949_vm0, %v4950_v6  ;;  %4461 = vmatpush3.msra.mxu1 %v3629_v49 }
 0xf42   : > { %4444 = vmatmul.mubr.msk.f32.gmra.mrb[42].mxu1 %vm846_vm1, %v3228_v23 }
 0xf43   : > { %4446 = vmatprep.mubr.msk.f32.mxu1 %vm4949_vm0, %v4950_v6 }
 0xf46   : > { %4447 = vmatmul.mubr.msk.f32.gmra.mrb[44].mxu1 %vm846_vm1, %v3229_v26 }
 0xf47   : > { %4462 = vmatprep.mubr.msk.f32.mxu1 %vm4949_vm0, %v4950_v6 }
 0xfff   : > { %v5675_v59 = vpop.f32.mrb[34].mxu1  ;;  %v3400_v27 = vpop.f32.mrb[22].mxu0 }
0x1000   : > { %v4408_v29 = vpop.f32.mrb[35].mxu1  ;;  %v4425_v63 = vpop.f32.mrb[23].mxu0  ;;  %v3415_v30 = vsel %vm3414_vm8, %v3400_v27, -inf }
0x1001   : > { %3416 = vmax.xlane.f32.xlu1 %v3415_v30 }
0x1008   : > { %v5678_v4 = vpop.f32.mrb[36].mxu1  ;;  %v3405_v35 = vpop.f32.mrb[24].mxu0 }
0x1009   : > { %v4411_v61 = vpop.f32.mrb[37].mxu1  ;;  %v4428_v31 = vpop.f32.mrb[25].mxu0  ;;  %v3418_v44 = vsel %vm3414_vm8, %v3405_v35, -inf }
0x100a   : > { %3419 = vmax.xlane.f32.xlu0 %v3418_v44 }
0x100d   : > { %v5681_v32 = vpop.f32.mrb[38].mxu1  ;;  %v3410_v39 = vpop.f32.mrb[26].mxu0 }
0x100e   : > { %v4414_v33 = vpop.f32.mrb[39].mxu1  ;;  %v4431_v34 = vpop.f32.mrb[27].mxu0  ;;  %v3421_v5 = vsel %vm3414_vm8, %v3410_v39, -inf }
0x100f   : > { %3422 = vmax.xlane.f32.xlu0 %v3421_v5 }
0x1011   : > { %v3518_v36 = vpop.f32.mrb[40].mxu1 }
0x1012   : > { %v4442_v37 = vpop.f32.mrb[41].mxu1 }
0x1015   : > { %v3523_v52 = vpop.f32.mrb[42].mxu1 }
0x1016   : > { %v4445_v38 = vpop.f32.mrb[43].mxu1 }
0x1019   : > { %v3528_v1 = vpop.f32.mrb[44].mxu1 }
0x101a   : > { %v4448_v40 = vpop.f32.mrb[45].mxu1 }
0x108e   : > { %v3417_v45 = vpop.xlane.xlu1 %3416 }
0x108f   : > { %v3424_v28 = vsub.f32 %v3400_v27, %v3417_v45 }
0x1091   : > { %v3427_v41 = vmul.f32 1.442695, %v3424_v28 }
0x1093   : > { %4812 = vpow2.f32 %v3427_v41 }
0x1097   : > { %v3420_v42 = vpop.xlane.xlu0 %3419 }
0x1098   : > { %v3425_v43 = vsub.f32 %v3405_v35, %v3420_v42 }
0x109a   : > { %v3429_v46 = vmul.f32 1.442695, %v3425_v43 }
0x109c   : > { %4814 = vpow2.f32 %v3429_v46  ;;  %v3423_v47 = vpop.xlane.xlu0 %3422 }
0x109d   : > { %v4813_v48 = vpop.eup %4812  ;;  %v3426_v50 = vsub.f32 %v3410_v39, %v3423_v47 }
0x109e   : > { %v3433_v51 = vsel %vm3414_vm8, %v4813_v48, 0.0 }
0x109f   : > { %v3431_v53 = vmul.f32 1.442695, %v3426_v50  ;;  %3434 = vadd.xlane.f32.xlu1 %v3433_v51 }
0x10a1   : > { %4816 = vpow2.f32 %v3431_v53 }
0x10a6   : > { %v4815_v55 = vpop.eup %4814 }
0x10a7   : > { %v3436_v56 = vsel %vm3414_vm8, %v4815_v55, 0.0 }
0x10a8   : > { %3437 = vadd.xlane.f32.xlu0 %v3436_v56 }
0x10ab   : > { %v4817_v57 = vpop.eup %4816 }
0x10ac   : > { %v3439_v58 = vsel %vm3414_vm8, %v4817_v57, 0.0 }
0x10ad   : > { %3440 = vadd.xlane.f32.xlu1 %v3439_v58 }
0x112c   : > { %v3435_v2 = vpop.xlane.xlu1 %3434 }
0x112d   : > { %4818 = vrcp.f32 %v3435_v2 }
0x1135   : > { %v3438_v7 = vpop.xlane.xlu0 %3437 }
0x1136   : > { %4820 = vrcp.f32 %v3438_v7 }
0x1137   : > { %v4819_v9 = vpop.eup %4818 }
0x1138   : > { %v3445_v10 = vmul.f32 %v4819_v9, %v4813_v48 }
0x113a   : > { %v3441_v11 = vpop.xlane.xlu1 %3440  ;;  %4452 = vmatmul.mubr.msk.f32.vlgmr.msra.gmra.mrb[28].mxu0 %vm3414_vm8, %v3445_v10 }
0x113b   : > { %4822 = vrcp.f32 %v3441_v11  ;;  %4454 = vmatprep.mubr.msk.f32.mxu0 %vm4949_vm0, %v4950_v6 }
0x1140   : > { %v4821_v12 = vpop.eup %4820 }
0x1141   : > { %v3446_v0 = vmul.f32 %v4821_v12, %v4815_v55 }
0x1143   : > { %4455 = vmatmul.mubr.msk.f32.gmra.mrb[30].mxu0 %vm3414_vm8, %v3446_v0 }
0x1144   : > { %4457 = vmatprep.mubr.msk.f32.mxu0 %vm4949_vm0, %v4950_v6 }
0x1145   : > { %v4823_v13 = vpop.eup %4822 }
0x1146   : > { %v3447_v14 = vmul.f32 %v4823_v13, %v4817_v57 }
0x1148   : > { %4458 = vmatmul.mubr.msk.f32.gmra.mrb[32].mxu0 %vm3414_vm8, %v3447_v14 }
0x120d   : > { %v3612_v8 = vpop.f32.mrb[28].mxu0 }
0x120e   : > { %v3626_v15 = vmul.f32 %v3612_v8, %v3518_v36  ;;  %v4453_v16 = vpop.f32.mrb[29].mxu0 }
0x1210   : > { %4463 = vmatmul.mubr.msk.f32.vlgmr.msra.gmra.mrb[46].mxu1 %vm1695_vm4, %v3626_v15 }
0x1211   : > { %4465 = vmatprep.mubr.msk.f32.mxu1 %vm4949_vm0, %v4950_v6 }
0x1216   : > { %v3617_v17 = vpop.f32.mrb[30].mxu0 }
0x1217   : > { %v3627_v18 = vmul.f32 %v3617_v17, %v3523_v52  ;;  %v4456_v54 = vpop.f32.mrb[31].mxu0 }
0x1219   : > { %4466 = vmatmul.mubr.msk.f32.gmra.mrb[48].mxu1 %vm1695_vm4, %v3627_v18 }
0x121a   : > { %4468 = vmatprep.mubr.msk.f32.mxu1 %vm4949_vm0, %v4950_v6 }
0x121b   : > { %v3622_v19 = vpop.f32.mrb[32].mxu0 }
0x121c   : > { %v3628_v20 = vmul.f32 %v3622_v19, %v3528_v1  ;;  %v4459_v21 = vpop.f32.mrb[33].mxu0 }
0x121e   : > { %4469 = vmatmul.mubr.msk.f32.gmra.mrb[50].mxu1 %vm1695_vm4, %v3628_v20 }
0x121f   : > { %4837 = shalt.err (!%p4834_p3)
}
0x1220   : > { %s4838_s30 = scalar_lea.hbm %s5714_s0, 128  ;;  %s4842_s6 = scalar_lea.hbm %s5849_s24, 256 }
0x1221   : > { %p4839_p4 = scmp.ne.s32.totalorder %s5714_s0, %s4838_s30  ;;  %p4843_p9 = scmp.lt.u32.totalorder %s5714_s0, %s5849_s24 }
0x1222   : > { %p4844_p10 = scmp.lt.u32.totalorder %s4842_s6, %s4838_s30  ;;  %p4846_p12 = scmp.lt.u32.totalorder %s4838_s30, %s5714_s0 }
0x1223   : > { %p4840_p7 = pnand %p4839_p4, %p5141_p5 }
0x1224   : > { %p4845_p11 = por %p4844_p10, %p4843_p9 }
0x1225   : > { %p4841_p8 = pneg %p4840_p7 }
0x1226   : > { %p4847_p13 = por %p4846_p12, %p4845_p11 }
0x1228   : > { %p4848_p0 = pnand %p4847_p13, %p4841_p8 }
0x122a   : > { %4851 = shalt.err (!%p4848_p0)
}
0x122b   : > { %4615 = dma.vmem_to_hbm [thread:$0]  (%p5141_p5), %s3772_s1, 128, %s5714_s0, %s5717_s12  }
0x122c   : > { %s5742_s13 = scalar_lea.hbm %s5850_s25, %s4032_s29  ;;  %s3784_s28 = sshll.u32 %s5440_s9, 4  ;;  %s3785_s28 = int_to_ptr.vmem [resolvable:$true] %s3784_s28 }
0x122d   : > { %s4852_s30 = scalar_lea.vmem %s3785_s28, 128  ;;  %s4968_s6 = smov [#allocation6]  }
0x122e   : > { %p4853_p1 = scmp.ne.s32.totalorder %s3785_s28, %s4852_s30  ;;  %s4856_s27 = sshll.u32 %s4968_s6, 4  ;;  %s4857_s27 = int_to_ptr.vmem [resolvable:$false] %s4856_s27 }
0x122f   : > { %s4858_s23 = scalar_lea.vmem %s4857_s27, 256  ;;  %p4859_p4 = scmp.lt.s32.totalorder %s3785_s28, %s4857_s27 }
0x1230   : > { %p4854_p2 = pnand %p4853_p1, %p5141_p5  ;;  %p4860_p7 = scmp.lt.s32.totalorder %s4858_s23, %s4852_s30 }
0x1232   : > { %p4855_p3 = pneg %p4854_p2  ;;  %p4861_p8 = por %p4860_p7, %p4859_p4 }
0x1234   : > { %p4862_p9 = pnand %p4861_p8, %p4855_p3 }
0x1236   : > { %4865 = shalt.err (!%p4862_p9)
}
0x1237   : > { %s4866_s9 = scalar_lea.hbm %s5742_s13, 128  ;;  %s4870_s1 = scalar_lea.hbm %s5850_s25, 256 }
0x1238   : > { %p4867_p10 = scmp.ne.s32.totalorder %s5742_s13, %s4866_s9  ;;  %p4871_p13 = scmp.lt.u32.totalorder %s5742_s13, %s5850_s25 }
0x1239   : > { %p4872_p0 = scmp.lt.u32.totalorder %s4870_s1, %s4866_s9  ;;  %p4874_p2 = scmp.lt.u32.totalorder %s4866_s9, %s5742_s13 }
0x123a   : > { %p4868_p11 = pnand %p4867_p10, %p5141_p5 }
0x123b   : > { %p4873_p1 = por %p4872_p0, %p4871_p13 }
0x123c   : > { %p4869_p12 = pneg %p4868_p11 }
0x123d   : > { %p4875_p3 = por %p4874_p2, %p4873_p1 }
0x123f   : > { %p4876_p4 = pnand %p4875_p3, %p4869_p12 }
0x1241   : > { %4879 = shalt.err (!%p4876_p4)
}
0x1242   : > { %4616 = dma.vmem_to_hbm [thread:$0]  (%p5141_p5), %s3785_s28, 128, %s5742_s13, %s5717_s12  }
0x1243   : > { %s4611_s30 = smul.u32 24, %s5359_s26  ;;  %s5910_s23 = sld [smem:[#allocation22_spill]] }
0x1244   : > { %s4613_s13 = smul.u32 384, %s5122_s7  ;;  %s5911_s0 = sld [smem:[#allocation29_spill]] }
0x1245   : > { %s800_s9 = scalar_lea.vmem [#allocation2], %s4611_s30  ;;  %s3732_s7 = scalar_lea.sflag [#allocation3], %s5359_s26 }
0x1246   : > { %s3755_s12 = sshll.u32 %s800_s9, 4  ;;  %s4969_s15 = smov [#allocation2]   ;;  %s5773_s12 = int_to_ptr.vmem [resolvable:$true] %s3755_s12 }
0x1247   : > { %s4880_s3 = scalar_lea.vmem %s5773_s12, 384  ;;  %s4884_s30 = sshll.u32 %s4969_s15, 4  ;;  %s4885_s30 = int_to_ptr.vmem [resolvable:$false] %s4884_s30 }
0x1248   : > { %p4881_p7 = scmp.ne.s32.totalorder %s5773_s12, %s4880_s3  ;;  %s4886_s6 = scalar_lea.vmem %s4885_s30, 768 }
0x1249   : > { %v4012_v6 = vld [vmem:[%s5910_s23] ss:$0 sm:$0xff]  ;;  %p4887_p10 = scmp.lt.s32.totalorder %s5773_s12, %s4885_s30  ;;  %p4888_p11 = scmp.lt.s32.totalorder %s4886_s6, %s4880_s3 }
0x124a   : > { %v3317_v23 = vadd.f32 %v4012_v6, %v5675_v59  ;;  %v3322_v26 = vadd.f32 %v4012_v6, %v5678_v4  ;;  %v3327_v59 = vadd.f32 %v4012_v6, %v5681_v32  ;;  %s5778_s1 = scalar_lea.hbm %s5911_s0, %s4613_s13  ;;  %p4882_p8 = pnand %p4881_p7, %p5141_p5 }
0x124b   : > { %p4889_p12 = por %p4888_p11, %p4887_p10 }
0x124c   : > { %p4883_p9 = pneg %p4882_p8 }
0x124e   : > { %p4890_p13 = pnand %p4889_p12, %p4883_p9 }
0x12e3   : > { %v3705_v22 = vpop.f32.mrb[46].mxu1 }
0x12e4   : > { %v3719_v3 = vmul.f32 0.25, %v3705_v22  ;;  %v4464_v60 = vpop.f32.mrb[47].mxu1 }
0x12e6   : > { %v3722_v24 = vadd.f32 %v3719_v3, %v3317_v23 }
0x12e8   : > { %3725 = vst.msk [vmem:[%s800_s9] sm:$0xff] %vm846_vm1, %v3722_v24 }
0x12ec   : > { %v3710_v25 = vpop.f32.mrb[48].mxu1 }
0x12ed   : > { %v3720_v27 = vmul.f32 0.25, %v3710_v25  ;;  %v4467_v29 = vpop.f32.mrb[49].mxu1 }
0x12ef   : > { %v3723_v63 = vadd.f32 %v3720_v27, %v3322_v26 }
0x12f1   : > { %3726 = vst.msk [vmem:[%s800_s9 + $0x8] sm:$0xff] %vm846_vm1, %v3723_v63  ;;  %v3715_v30 = vpop.f32.mrb[50].mxu1 }
0x12f2   : > { %v3721_v35 = vmul.f32 0.25, %v3715_v30  ;;  %v4470_v61 = vpop.f32.mrb[51].mxu1 }
0x12f4   : > { %v3724_v31 = vadd.f32 %v3721_v35, %v3327_v59 }
0x12f6   : > { %3727 = vst.msk [vmem:[%s800_s9 + $0x10] sm:$0xff] %vm846_vm1, %v3724_v31 }
0x12f7   : > { %4893 = shalt.err (!%p4890_p13)
}
0x12f8   : > { %s4894_s27 = scalar_lea.hbm %s5778_s1, 384  ;;  %s4898_s13 = scalar_lea.hbm %s5911_s0, 768 }
0x12f9   : > { %p4895_p0 = scmp.ne.s32.totalorder %s5778_s1, %s4894_s27  ;;  %p4899_p3 = scmp.lt.u32.totalorder %s5778_s1, %s5911_s0 }
0x12fa   : > { %p4900_p4 = scmp.lt.u32.totalorder %s4898_s13, %s4894_s27  ;;  %p4902_p8 = scmp.lt.u32.totalorder %s4894_s27, %s5778_s1 }
0x12fb   : > { %p4896_p1 = pnand %p4895_p0, %p5141_p5 }
0x12fc   : > { %p4901_p7 = por %p4900_p4, %p4899_p3 }
0x12fd   : > { %p4897_p2 = pneg %p4896_p1 }
0x12fe   : > { %p4903_p9 = por %p4902_p8, %p4901_p7 }
0x1300   : > { %p4904_p10 = pnand %p4903_p9, %p4897_p2 }
0x1302   : > { %4907 = shalt.err (!%p4904_p10)
}
0x1303   : > { %s4970_s3 = smov 128  }
0x1304   : > { %4614 = dma.vmem_to_hbm [thread:$0]  (%p5141_p5), %s5773_s12, 384, %s5778_s1, %s3732_s7, %s4970_s3, %s4970_s3, %s5907_s14  }
0x1305 PF: > { %s5912_s15 = sld [smem:[#allocation11_spill]]  ;;  %s5913_s30 = sld [smem:[#allocation9_spill]] }
0x130b   : > { %p4630_p11 = scmp.ge.s32.totalorder %s5912_s15, 2  ;;  %s3796_s23 = sand.u32 1, %s5913_s30  }
0x130c   : > { %s3797_s27 = scalar_lea.sflag [#allocation3], %s3796_s23 }
0x130d   : > { %p4621_p12 = pnand %p4630_p11, %p5145_p6 }
0x130f   : > { %4925 = dma.done.wait (!%p4621_p12), %s3797_s27, 384  }
0x1310   : > { %4927 = vsyncadd (!%p4621_p12), %s3797_s27, 4294966912  ;;  %s5915_s9 = sadd.s32 4294967294, %s5912_s15  }
0x1311   : > { %s3805_s4 = sand.u32 1, %s5915_s9  }
0x1312   : > { %s3806_s13 = scalar_lea.sflag [#allocation5], %s3805_s4 }
0x1313   : > { %4929 = dma.done.wait (!%p4621_p12), %s3806_s13, 256  }
0x1314   : > { %4931 = vsyncadd (!%p4621_p12), %s3806_s13, 4294967040  ;;  %s5916_s30 = sld [smem:[#allocation12_spill]]  ;;  %s5917_s26 = sld [smem:[#allocation10_spill]] }
0x1315   : > { %s5918_s6 = sld [smem:[#allocation13_spill]]  ;;  %s5919_s29 = smov %s4938_s2 }
0x131a   : > { %p39_p5 = scmp.ge.s32.totalorder %s5916_s30, 4   ;;  %s5920_s2 = smov %s5917_s26 }
0x131c   :  { %41 = sbr.rel (!%p39_p5) target bundleno = 21 (0x15), region = 188 }
0x1323   :  { %3820 = vsyncpa [#allocation3], 1 }
0x1324   :  { %3822 = vsyncpa [#allocation3 + $0x1], 1 }
0x1325   :  { %3823 = vsyncpa [#allocation5], 1 }
0x1326   :  { %3825 = vsyncpa [#allocation5 + $0x1], 1 }

</bundles_post_ra>
